<compile_context>
chip_gen: v7x
topology: tpu7x:2x2x1
jax: 0.10.0
libtpu: 0.0.40
codegen_flags: <defaults>
</compile_context>

<pallas_src>
import functools

import jax
import jax.numpy as jnp
from jax.experimental import pallas as pl
from jax.experimental.pallas import tpu as pltpu


def gcn_kernel(a1_ref, a2_ref, hw1_ref, b1_ref, w2_ref, b2_ref, out_ref, xw_ref,
               *, r_tiles, tm):
    """One grid step = (graph b, phase/tile step s).

    a1_ref : (TM, N)       bf16  row tile of A1_hat[b]        (phase 1)
    a2_ref : (TM, N)       bf16  row tile of A2_hat[b]        (phase 2)
    hw1_ref: (N, HID)      bf16  h[b] @ W1 (precomputed, per-graph resident)
    b1_ref : (1, HID)      f32
    w2_ref : (HID, OUT)    bf16  W2 with dropout mask folded in
    b2_ref : (1, OUT)      f32
    out_ref: (TM, OUT)     f32   pipelined output block (phase 2 only)
    xw_ref : (N, OUT)      bf16  scratch: (relu(A1@hW1+b1)*mask) @ W2
    """
    step = pl.program_id(1)

    @pl.when(step < r_tiles)
    def _phase1():
        # Layer 1 on this node-row tile; dropout mask is pre-folded into W2.
        x = jnp.dot(a1_ref[...], hw1_ref[...], preferred_element_type=jnp.float32)
        x = jnp.maximum(x + b1_ref[...], 0.0)
        xw = jnp.dot(x.astype(jnp.bfloat16), w2_ref[...],
                     preferred_element_type=jnp.float32)
        row0 = pl.multiple_of(jnp.minimum(step, r_tiles - 1) * tm, tm)
        xw_ref[pl.ds(row0, tm), :] = xw.astype(jnp.bfloat16)

    @pl.when(step >= r_tiles)
    def _phase2():
        # Layer 2 on this node-row tile: y[tile] = A2[tile, :] @ xw + b2.
        y = jnp.dot(a2_ref[...], xw_ref[...], preferred_element_type=jnp.float32)
        out_ref[...] = (y + b2_ref[...]).astype(out_ref.dtype)


def _tpu_vmem_bytes():
    try:
        return int(pltpu.get_tpu_info().vmem_capacity_bytes)
    except Exception:
        return None


def _pick_tm(n, vmem_cap_bytes):
    """Largest row tile that keeps the streaming working set comfortable."""
    if n <= 512:
        return n
    tm = 256 if vmem_cap_bytes <= 64 * 1024 * 1024 else 512
    while tm >= 16 and n % tm != 0:
        tm //= 2
    return tm if (tm >= 16 and n % tm == 0) else n


def gcn_forward(a1_hat, a2_hat, h, w1, b1, w2, b2, p, *, tm=None):
    """Batched fused 2-layer GCN forward.

    a1_hat, a2_hat : (B, N, N) symmetric-normalized dense adjacencies
    h              : (B, N, IN) node features
    w1/b1, w2/b2   : shared GraphConv parameters
    p              : (HID,) VariationalDropout retain probabilities
    """
    B, N, _ = a1_hat.shape
    hid = w1.shape[1]
    out_dim = w2.shape[1]
    assert N % 8 == 0, "node count must be a multiple of 8"

    vmem_cap = _tpu_vmem_bytes()
    if vmem_cap is None:
        vmem_cap_eff, vmem_limit = 64 * 1024 * 1024, None      # conservative tiling
    elif vmem_cap <= 64 * 1024 * 1024:                          # v7x-class part
        vmem_cap_eff, vmem_limit = vmem_cap, 48 * 1024 * 1024
    else:                                                       # v5e / v6e (128 MiB)
        vmem_cap_eff, vmem_limit = vmem_cap, 96 * 1024 * 1024

    if tm is None:
        tm = _pick_tm(N, vmem_cap_eff)
    assert N % tm == 0, "node count must be a multiple of the row tile"
    r_tiles = N // tm

    # Feature transform once in XLA (kernel is adjacency-bandwidth-bound) and
    # fold the deterministic dropout mask into W2: (x*m) @ W2 == x @ (diag(m) W2).
    hw1 = jnp.einsum("bnf,fh->bnh", h.astype(jnp.float32),
                     w1.astype(jnp.float32)).astype(jnp.bfloat16)
    mask = jnp.clip(p.astype(jnp.float32), 0.0, 1.0)
    w2_scaled = (mask[:, None] * w2.astype(jnp.float32)).astype(jnp.bfloat16)

    a1_b = a1_hat.astype(jnp.bfloat16)
    a2_b = a2_hat.astype(jnp.bfloat16)
    b1_2d = b1.reshape(1, hid).astype(jnp.float32)
    b2_2d = b2.reshape(1, out_dim).astype(jnp.float32)

    # Index maps: A1 only advances during phase 1, A2/out only during phase 2;
    # the clamped indices keep the "idle" stream's block constant (no extra DMA).
    a1_map = lambda b, s: (b, jnp.minimum(s, r_tiles - 1), 0)
    a2_map = lambda b, s: (b, jnp.maximum(s - r_tiles, 0), 0)
    out_map = lambda b, s: (b, jnp.maximum(s - r_tiles, 0), 0)

    grid_spec = pltpu.PrefetchScalarGridSpec(
        num_scalar_prefetch=0,
        grid=(B, 2 * r_tiles),
        in_specs=[
            pl.BlockSpec((None, tm, N), a1_map),                  # A1 row tile
            pl.BlockSpec((None, tm, N), a2_map),                  # A2 row tile
            pl.BlockSpec((None, N, hid), lambda b, s: (b, 0, 0)),  # hW1 (per graph)
            pl.BlockSpec((1, hid), lambda b, s: (0, 0)),           # b1
            pl.BlockSpec((hid, out_dim), lambda b, s: (0, 0)),     # W2 (mask folded)
            pl.BlockSpec((1, out_dim), lambda b, s: (0, 0)),       # b2
        ],
        out_specs=pl.BlockSpec((None, tm, out_dim), out_map),
        scratch_shapes=[
            pltpu.VMEM((N, out_dim), jnp.bfloat16),   # xw = (layer-1 out) @ W2
        ],
    )

    cp_kwargs = dict(dimension_semantics=("parallel", "arbitrary"))
    if vmem_limit is not None:
        cp_kwargs["vmem_limit_bytes"] = vmem_limit

    kernel = functools.partial(gcn_kernel, r_tiles=r_tiles, tm=tm)
    return pl.pallas_call(
        kernel,
        out_shape=jax.ShapeDtypeStruct((B, N, out_dim), jnp.float32),
        grid_spec=grid_spec,
        compiler_params=pltpu.CompilerParams(**cp_kwargs),
    )(a1_b, a2_b, hw1, b1_2d, w2_scaled, b2_2d)


def gcn_reference(a1, a2, h, w1, b1, w2, b2, p):
    """Plain-JAX f32 reference with the original module semantics."""
    hp = jax.lax.Precision.HIGHEST
    mask = jnp.clip(p, 0.0, 1.0)[None, None, :]
    hw = jnp.einsum("bnf,fh->bnh", h, w1, precision=hp)
    x = jnp.einsum("bmn,bnh->bmh", a1, hw, precision=hp)
    x = jnp.maximum(x + b1[None, None, :], 0.0) * mask
    xw = jnp.einsum("bnh,ho->bno", x, w2, precision=hp)
    y = jnp.einsum("bmn,bno->bmo", a2, xw, precision=hp)
    return y + b2[None, None, :]


def _sym_norm_adj(key, n):
    """Random undirected graph with self-loops: D^-1/2 (A+I) D^-1/2 (glue, plain JAX)."""
    raw = jax.random.bernoulli(key, p=0.15, shape=(n, n)).astype(jnp.float32)
    a = jnp.maximum(raw, raw.T)
    a = jnp.maximum(a, jnp.eye(n, dtype=jnp.float32))
    deg = jnp.sum(a, axis=1)
    d_inv_sqrt = 1.0 / jnp.sqrt(deg)
    return a * d_inv_sqrt[:, None] * d_inv_sqrt[None, :]


def _xavier_normal(key, shape, gain=1.0):
    fan_in, fan_out = shape
    std = gain * (2.0 / (fan_in + fan_out)) ** 0.5
    return std * jax.random.normal(key, shape, dtype=jnp.float32)


if __name__ == "__main__":
    # Small shapes consistent with the module: B graphs, N nodes, in -> hid -> out.
    B, N, IN_DIM, HID_DIM, OUT_DIM = 2, 256, 16, 32, 8
    DROPOUT = 0.5

    key = jax.random.PRNGKey(0)
    k_adj, k_h, k_w1, k_w2 = jax.random.split(key, 4)

    # blocks[0], blocks[1] -> dense normalized adjacencies, one pair per graph.
    adj_keys = jax.random.split(k_adj, 2 * B)
    a1_hat = jnp.stack([_sym_norm_adj(adj_keys[i], N) for i in range(B)])
    a2_hat = jnp.stack([_sym_norm_adj(adj_keys[B + i], N) for i in range(B)])

    # node features
    h = jax.random.normal(k_h, (B, N, IN_DIM), dtype=jnp.float32)

    # GraphConv parameters (deterministic xavier-normal init, relu gain)
    gain = 2.0 ** 0.5
    w1 = _xavier_normal(k_w1, (IN_DIM, HID_DIM), gain)
    b1 = jnp.zeros((HID_DIM,), dtype=jnp.float32)
    w2 = _xavier_normal(k_w2, (HID_DIM, OUT_DIM), gain)
    b2 = jnp.zeros((OUT_DIM,), dtype=jnp.float32)

    # VariationalDropout retain probabilities: torch.Tensor([dropout] * hid_dim)
    p = jnp.full((HID_DIM,), DROPOUT, dtype=jnp.float32)

    out = gcn_forward(a1_hat, a2_hat, h, w1, b1, w2, b2, p)
    jax.block_until_ready(out)

    ref = gcn_reference(a1_hat, a2_hat, h, w1, b1, w2, b2, p)
    assert out.shape == (B, N, OUT_DIM)
    assert jnp.allclose(out, ref, atol=2e-2, rtol=2e-2), (
        float(jnp.max(jnp.abs(out - ref))))

    print("KERNEL_OK")
</pallas_src>

<mosaic_0001>
module attributes {stable_mosaic.version = 11 : i64} {
  func.func @gcn_kernel(%arg0: i32, %arg1: i32, %arg2: memref<1x256x256xbf16, #tpu.memory_space<vmem>>, %arg3: memref<1x256x256xbf16, #tpu.memory_space<vmem>>, %arg4: memref<1x256x32xbf16, #tpu.memory_space<vmem>>, %arg5: memref<1x32xf32, #tpu.memory_space<vmem>>, %arg6: memref<32x8xbf16, #tpu.memory_space<vmem>>, %arg7: memref<1x8xf32, #tpu.memory_space<vmem>>, %arg8: memref<1x256x8xf32, #tpu.memory_space<vmem>>, %arg9: memref<256x8xbf16, #tpu.memory_space<vmem>>) attributes {dimension_semantics = [#tpu.dimension_semantics<parallel>, #tpu.dimension_semantics<arbitrary>], iteration_bounds = array<i64: 2, 2>, scalar_prefetch = 0 : i64, scratch_operands = 1 : i64, tpu.core_type = #tpu.core_type<tc>, window_params = [{transform_indices = @transform_0, window_bounds = array<i64: 1, 256, 256>}, {transform_indices = @transform_1, window_bounds = array<i64: 1, 256, 256>}, {transform_indices = @transform_2, window_bounds = array<i64: 1, 256, 32>}, {pipeline_mode = #tpu.pipeline_mode<synchronous>, transform_indices = @transform_3, window_bounds = array<i64: 1, 32>}, {pipeline_mode = #tpu.pipeline_mode<synchronous>, transform_indices = @transform_4, window_bounds = array<i64: 32, 8>}, {pipeline_mode = #tpu.pipeline_mode<synchronous>, transform_indices = @transform_5, window_bounds = array<i64: 1, 8>}, {transform_indices = @transform_6, window_bounds = array<i64: 1, 256, 8>}]} {
    %c1_i32 = arith.constant 1 : i32
    %0 = arith.cmpi slt, %arg1, %c1_i32 : i32
    %1 = arith.extui %0 : i1 to i32
    %c0_i32 = arith.constant 0 : i32
    %2 = arith.cmpi ne, %1, %c0_i32 : i32
    scf.if %2 {
      %c0 = arith.constant 0 : index
      %c0_2 = arith.constant 0 : index
      %c0_3 = arith.constant 0 : index
      %6 = vector.load %arg2[%c0, %c0_2, %c0_3] : memref<1x256x256xbf16, #tpu.memory_space<vmem>>, vector<1x256x256xbf16>
      %7 = vector.shape_cast %6 : vector<1x256x256xbf16> to vector<256x256xbf16>
      %c0_4 = arith.constant 0 : index
      %c0_5 = arith.constant 0 : index
      %c0_6 = arith.constant 0 : index
      %8 = vector.load %arg4[%c0_4, %c0_5, %c0_6] : memref<1x256x32xbf16, #tpu.memory_space<vmem>>, vector<1x256x32xbf16>
      %9 = vector.shape_cast %8 : vector<1x256x32xbf16> to vector<256x32xbf16>
      %cst = arith.constant dense<0.000000e+00> : vector<256x32xf32>
      %10 = tpu.matmul %7, %9, %cst {dimension_numbers = #tpu.dot_dimension_numbers<[1], [0], [0], [1], [0, 0, 1, 1], [], []>} : vector<256x256xbf16>, vector<256x32xbf16>, vector<256x32xf32> -> vector<256x32xf32>
      %c0_7 = arith.constant 0 : index
      %c0_8 = arith.constant 0 : index
      %11 = vector.load %arg5[%c0_7, %c0_8] : memref<1x32xf32, #tpu.memory_space<vmem>>, vector<1x32xf32>
      %12 = vector.broadcast %11 : vector<1x32xf32> to vector<256x32xf32>
      %13 = arith.addf %10, %12 : vector<256x32xf32>
      %cst_9 = arith.constant 0.000000e+00 : f32
      %14 = vector.broadcast %cst_9 : f32 to vector<256x32xf32>
      %15 = arith.maximumf %13, %14 : vector<256x32xf32>
      %16 = arith.truncf %15 : vector<256x32xf32> to vector<256x32xbf16>
      %c0_10 = arith.constant 0 : index
      %c0_11 = arith.constant 0 : index
      %17 = vector.load %arg6[%c0_10, %c0_11] : memref<32x8xbf16, #tpu.memory_space<vmem>>, vector<32x8xbf16>
      %cst_12 = arith.constant dense<0.000000e+00> : vector<256x8xf32>
      %18 = tpu.matmul %16, %17, %cst_12 {dimension_numbers = #tpu.dot_dimension_numbers<[1], [0], [0], [1], [0, 0, 1, 1], [], []>} : vector<256x32xbf16>, vector<32x8xbf16>, vector<256x8xf32> -> vector<256x8xf32>
      %c0_i32_13 = arith.constant 0 : i32
      %19 = arith.minsi %arg1, %c0_i32_13 : i32
      %c256_i32 = arith.constant 256 : i32
      %20 = arith.muli %19, %c256_i32 : i32
      %21 = tpu.assume_multiple %20, 256 : i32
      %22 = arith.truncf %18 : vector<256x8xf32> to vector<256x8xbf16>
      %23 = arith.index_cast %21 : i32 to index
      %c0_14 = arith.constant 0 : index
      %24 = vector.load %arg9[%23, %c0_14] : memref<256x8xbf16, #tpu.memory_space<vmem>>, vector<256x8xbf16>
      tpu.vector_store %arg9[%23, %c0_14], %22 {strides = array<i32>} : memref<256x8xbf16, #tpu.memory_space<vmem>>, vector<256x8xbf16>,
    } else {
    }
    %c1_i32_0 = arith.constant 1 : i32
    %3 = arith.cmpi sge, %arg1, %c1_i32_0 : i32
    %4 = arith.extui %3 : i1 to i32
    %c0_i32_1 = arith.constant 0 : i32
    %5 = arith.cmpi ne, %4, %c0_i32_1 : i32
    scf.if %5 {
      %c0 = arith.constant 0 : index
      %c0_2 = arith.constant 0 : index
      %c0_3 = arith.constant 0 : index
      %6 = vector.load %arg3[%c0, %c0_2, %c0_3] : memref<1x256x256xbf16, #tpu.memory_space<vmem>>, vector<1x256x256xbf16>
      %7 = vector.shape_cast %6 : vector<1x256x256xbf16> to vector<256x256xbf16>
      %c0_4 = arith.constant 0 : index
      %c0_5 = arith.constant 0 : index
      %8 = vector.load %arg9[%c0_4, %c0_5] : memref<256x8xbf16, #tpu.memory_space<vmem>>, vector<256x8xbf16>
      %cst = arith.constant dense<0.000000e+00> : vector<256x8xf32>
      %9 = tpu.matmul %7, %8, %cst {dimension_numbers = #tpu.dot_dimension_numbers<[1], [0], [0], [1], [0, 0, 1, 1], [], []>} : vector<256x256xbf16>, vector<256x8xbf16>, vector<256x8xf32> -> vector<256x8xf32>
      %c0_6 = arith.constant 0 : index
      %c0_7 = arith.constant 0 : index
      %10 = vector.load %arg7[%c0_6, %c0_7] : memref<1x8xf32, #tpu.memory_space<vmem>>, vector<1x8xf32>
      %11 = vector.broadcast %10 : vector<1x8xf32> to vector<256x8xf32>
      %12 = arith.addf %9, %11 : vector<256x8xf32>
      %c0_8 = arith.constant 0 : index
      %c0_9 = arith.constant 0 : index
      %c0_10 = arith.constant 0 : index
      %13 = vector.load %arg8[%c0_8, %c0_9, %c0_10] : memref<1x256x8xf32, #tpu.memory_space<vmem>>, vector<1x256x8xf32>
      %14 = vector.shape_cast %13 : vector<1x256x8xf32> to vector<256x8xf32>
      %15 = vector.shape_cast %12 : vector<256x8xf32> to vector<1x256x8xf32>
      tpu.vector_store %arg8[%c0_8, %c0_9, %c0_10], %15 {strides = array<i32>} : memref<1x256x8xf32, #tpu.memory_space<vmem>>, vector<1x256x8xf32>,
    } else {
    }
    return
  }
  func.func @transform_0(%arg0: i32, %arg1: i32) -> (i32, i32, i32) {
    %c0_i32 = arith.constant 0 : i32
    %0 = arith.minsi %arg1, %c0_i32 : i32
    %c0_i32_0 = arith.constant 0 : i32
    %c0_i32_1 = arith.constant 0 : i32
    return %arg0, %0, %c0_i32_0 : i32, i32, i32
  }
  func.func @transform_1(%arg0: i32, %arg1: i32) -> (i32, i32, i32) {
    %c1_i32 = arith.constant 1 : i32
    %0 = arith.subi %arg1, %c1_i32 : i32
    %c0_i32 = arith.constant 0 : i32
    %1 = arith.maxsi %0, %c0_i32 : i32
    %c0_i32_0 = arith.constant 0 : i32
    %c0_i32_1 = arith.constant 0 : i32
    return %arg0, %1, %c0_i32_0 : i32, i32, i32
  }
  func.func @transform_2(%arg0: i32, %arg1: i32) -> (i32, i32, i32) {
    %c0_i32 = arith.constant 0 : i32
    %c0_i32_0 = arith.constant 0 : i32
    %c0_i32_1 = arith.constant 0 : i32
    return %arg0, %c0_i32, %c0_i32_0 : i32, i32, i32
  }
  func.func @transform_3(%arg0: i32, %arg1: i32) -> (i32, i32) {
    %c0_i32 = arith.constant 0 : i32
    %c0_i32_0 = arith.constant 0 : i32
    %c0_i32_1 = arith.constant 0 : i32
    return %c0_i32, %c0_i32_0 : i32, i32
  }
  func.func @transform_4(%arg0: i32, %arg1: i32) -> (i32, i32) {
    %c0_i32 = arith.constant 0 : i32
    %c0_i32_0 = arith.constant 0 : i32
    %c0_i32_1 = arith.constant 0 : i32
    return %c0_i32, %c0_i32_0 : i32, i32
  }
  func.func @transform_5(%arg0: i32, %arg1: i32) -> (i32, i32) {
    %c0_i32 = arith.constant 0 : i32
    %c0_i32_0 = arith.constant 0 : i32
    %c0_i32_1 = arith.constant 0 : i32
    return %c0_i32, %c0_i32_0 : i32, i32
  }
  func.func @transform_6(%arg0: i32, %arg1: i32) -> (i32, i32, i32) {
    %c1_i32 = arith.constant 1 : i32
    %0 = arith.subi %arg1, %c1_i32 : i32
    %c0_i32 = arith.constant 0 : i32
    %1 = arith.maxsi %0, %c0_i32 : i32
    %c0_i32_0 = arith.constant 0 : i32
    %c0_i32_1 = arith.constant 0 : i32
    return %arg0, %1, %c0_i32_0 : i32, i32, i32
  }
}

</mosaic_0001>

<bundles_post_ra>
// kernel: tpu_custom_call.1
= control target key start
LH: loop header
LB: loop body
LE: loop exit
PB: predicated region body
PF: predicated region fallthrough
CT: control target
= control target key end

     0   :  { %s3198_s0 = inlined_call_operand.hbm [shape: bf16[2,256,256], index: 0, kind: input, shape index: {}]   ;;  %s3199_s1 = inlined_call_operand.hbm [shape: bf16[2,256,256], index: 1, kind: input, shape index: {}]   ;;  %s3200_s2 = inlined_call_operand.vmem [shape: bf16[2,256,32], index: 2, kind: input, shape index: {}]   ;;  %s3201_s3 = inlined_call_operand.vmem [shape: f32[1,32], index: 3, kind: input, shape index: {}]   ;;  %s3202_s4 = inlined_call_operand.vmem [shape: bf16[32,8], index: 4, kind: input, shape index: {}]   ;;  %s3203_s5 = inlined_call_operand.vmem [shape: f32[1,8], index: 5, kind: input, shape index: {}]   ;;  %s3204_s6 = inlined_call_operand.vmem [shape: f32[2,256,8], index: 6, kind: output, shape index: {}]  }
   0x1   :  { %3215 = sst [smem:[#allocation12_spill]] %s3198_s0 }
   0x2   :  { %11 = vsyncpa [#allocation4], 0 }
   0x3   :  { %13 = vsyncpa [#allocation4 + $0x1], 0 }
   0x4   :  { %14 = vsyncpa [#allocation6], 0 }
   0x5   :  { %16 = vsyncpa [#allocation6 + $0x1], 0  ;;  %s2629_s21 = smov 0   ;;  %s2631_s22 = smov 0  }
   0x6   :  { %s2633_s23 = smov 0   ;;  %s2635_s24 = smov 0  }
   0x7   :  { %s2637_s25 = smov 0   ;;  %s2639_s26 = smov 0  }
   0x8   :  { %s2641_s27 = smov 0   ;;  %s2643_s28 = smov 0  }
   0x9   :  { %s2645_s29 = smov 0   ;;  %s2647_s30 = smov 0  }
   0xa   :  { %s2649_s7 = smov 0  }
   0xb LB: > { %3216 = sst [smem:[#allocation9_spill]] %s2580_s29  ;;  %s1769_s8 = sadd.s32 4294967295, %s2588_s7   ;;  %s2588_s7 = sphi %s2649_s7, %s22_s7   ;;  %s2584_s30 = sphi %s2647_s30, %s3247_s30   ;;  %s2580_s29 = sphi %s2645_s29, %s3238_s29   ;;  %s2576_s28 = sphi %s2643_s28, %s3246_s28   ;;  %s2572_s27 = sphi %s2641_s27, %s3237_s27   ;;  %s2568_s26 = sphi %s2639_s26, %s3245_s26   ;;  %s2564_s25 = sphi %s2637_s25, %s3244_s25   ;;  %s2560_s24 = sphi %s2635_s24, %s3243_s24   ;;  %s2556_s23 = sphi %s2633_s23, %s3242_s23   ;;  %s2552_s22 = sphi %s2631_s22, %s3241_s22   ;;  %s2548_s21 = sphi %s2629_s21, %s3240_s21  }
   0xc   : > { %s31_s9 = sadd.s32 1, %s2580_s29  ;;  %s34_s10 = sadd.s32 1, %s2584_s30 }
   0xd   : > { %p32_p0 = scmp.ge.s32.totalorder %s31_s9, 2  ;;  %s47_s11 = sadd.s32 1, %s2568_s26 }
   0xe   : > { %p54_p2 = scmp.ne.s32.totalorder %s2568_s26, %s2564_s25  ;;  %p3209_p3 = scmp.eq.s32.totalorder %s2588_s7, 0 }
   0xf   : > { %s3249_s9 = smov (%p32_p0, %s31_s9), 0  ;;  %s3251_s10 = smov (!%p32_p0, %s34_s10), %s2584_s30 }
  0x10   : > { %3217 = sst [smem:[#allocation10_spill]] %s3249_s9  ;;  %p36_p1 = scmp.ge.s32.totalorder %s3251_s10, 2 }
  0x11   : > { %p2698_p4 = por %p3209_p3, %p54_p2  ;;  %p60_p5 = scmp.ne.s32.totalorder %s2564_s25, %s2560_s24 }
  0x12   : > { %s3253_s10 = smov (%p36_p1, %s3251_s10), 0  ;;  %p2703_p6 = scmp.eq.s32.totalorder %s1769_s8, 0 }
  0x13   : > { %3218 = sst [smem:[#allocation11_spill]] %s3253_s10  ;;  %s42_s12 = ssub.s32 %s2584_s30, %s3253_s10 }
  0x14   : > { %p2707_p7 = scmp.eq.s32.totalorder %s42_s12, 0  ;;  %p2713_p8 = por %p2703_p6, %p60_p5 }
  0x15   : > { %p3208_p9 = scmp.lt.s32.totalorder %s2588_s7, 4  ;;  %s250_s18 = sand.u32 1, %s2568_s26  }
  0x16   : > { %s3221_s15 = scalar_select %p2707_p7, 1, 0 }
  0x17   : > { %s3222_s16 = scalar_select %p2713_p8, 1, 0 }
  0x18   : > { %s2721_s17 = scalar_select %p2707_p7, %s2568_s26, %s47_s11  }
  0x19   : > { %s1777_s19 = sshll.u32 %s250_s18, 8  ;;  %s3206_s8 = sshll.u32 %s2584_s30, 12 }
  0x1a   : > { %s254_s20 = scalar_lea.vmem [#allocation3], %s1777_s19  ;;  %s3223_s0 = sld [smem:[#allocation12_spill]] }
  0x1b   : > { %s266_s24 = sshll.u32 %s254_s20, 4  ;;  %p2738_p10 = pnand %p3208_p9, %p2698_p4  ;;  %s2725_s24 = int_to_ptr.vmem [resolvable:$true] %s266_s24 }
  0x1c   : > { %s2743_s19 = scalar_lea.sflag [#allocation4], %s250_s18 }
  0x1d   : > { %p2434_p13 = pneg %p2738_p10 }
  0x20   : > { %s2732_s9 = scalar_lea.hbm %s3223_s0, %s3206_s8  ;;  %s2437_s12 = scalar_lea.hbm %s3223_s0, 8192 }
  0x21   : > { %s2432_s20 = scalar_lea.hbm %s2732_s9, 4096  ;;  %p2438_p2 = scmp.lt.u32.totalorder %s2732_s9, %s3223_s0 }
  0x22   : > { %p2433_p12 = scmp.ne.s32.totalorder %s2732_s9, %s2432_s20  ;;  %p2439_p4 = scmp.lt.u32.totalorder %s2437_s12, %s2432_s20 }
  0x23   : > { %p2441_p9 = scmp.lt.u32.totalorder %s2432_s20, %s2732_s9 }
  0x24   : > { %p2435_p0 = pnand %p2434_p13, %p2433_p12  ;;  %p2440_p5 = por %p2439_p4, %p2438_p2 }
  0x26   : > { %p2436_p1 = pneg %p2435_p0  ;;  %p2442_p3 = por %p2441_p9, %p2440_p5 }
  0x28   : > { %p2443_p11 = pnand %p2442_p3, %p2436_p1 }
  0x2a   : > { %2446 = shalt.err (!%p2443_p11)
}
  0x2b   : > { %s2447_s18 = scalar_lea.vmem %s2725_s24, 4096  ;;  %s2590_s10 = smov [#allocation3]  }
  0x2c   : > { %p2448_p12 = scmp.ne.s32.totalorder %s2725_s24, %s2447_s18  ;;  %s2452_s13 = sshll.u32 %s2590_s10, 4  ;;  %s2453_s13 = int_to_ptr.vmem [resolvable:$false] %s2452_s13 }
  0x2d   : > { %s2454_s29 = scalar_lea.vmem %s2453_s13, 8192  ;;  %p2455_p7 = scmp.lt.s32.totalorder %s2725_s24, %s2453_s13 }
  0x2e   : > { %p2450_p0 = pnand %p2448_p12, %p2434_p13  ;;  %p2456_p2 = scmp.lt.s32.totalorder %s2454_s29, %s2447_s18 }
  0x30   : > { %p2451_p8 = pneg %p2450_p0  ;;  %p2457_p4 = por %p2456_p2, %p2455_p7 }
  0x32   : > { %p2458_p9 = pnand %p2457_p4, %p2451_p8 }
  0x34   : > { %2461 = shalt.err (!%p2458_p9)
}
  0x35   : > { %s3212_s8 = smov 128   ;;  %s3213_s20 = smov 8  }
  0x36   : > { %2223 = dma.hbm_to_vmem [thread:$0]  (!%p2738_p10), %s2732_s9, 4096, %s2725_s24, %s2743_s19, %s3212_s8, %s3212_s8, %s3213_s20  }
  0x37   : > { %p309_p3 = scmp.lt.s32.totalorder %s2588_s7, 5  ;;  %p3225_p7 = scmp.ge.s32.totalorder %s2588_s7, 1 }
  0x38   : > { %p88_p11 = scmp.ne.s32.totalorder %s2556_s23, %s2552_s22  ;;  %s81_s18 = sadd.s32 1, %s2556_s23 }
  0x39   : > { %p2777_p8 = pnand %p3225_p7, %p309_p3  ;;  %p94_p13 = scmp.ne.s32.totalorder %s2552_s22, %s2548_s21 }
  0x3a   : > { %s276_s10 = sand.u32 1, %s2556_s23   ;;  %p3228_p5 = scmp.eq.s32.totalorder %s2588_s7, 0 }
  0x3b   : > { %p2789_p1 = por %p94_p13, %p2703_p6  ;;  %s1782_s11 = sshll.u32 %s276_s10, 8 }
  0x3c   : > { %p90_p12 = por %p88_p11, %p3228_p5  ;;  %p3229_p0 = scmp.ne.s32.totalorder %s3221_s15, 0 }
  0x3d   : > { %s3227_s13 = scalar_select %p2789_p1, 1, 0 }
  0x3e   : > { %s2798_s9 = scalar_select %p3229_p0, %s2556_s23, %s81_s18  }
  0x3f   : > { %s280_s24 = scalar_lea.vmem [#allocation5], %s1782_s11  ;;  %s3230_s29 = sshll.u32 %s2584_s30, 12 }
  0x40   : > { %s293_s19 = sshll.u32 %s280_s24, 4  ;;  %s2805_s0 = scalar_lea.hbm %s3199_s1, %s3230_s29  ;;  %s2807_s19 = int_to_ptr.vmem [resolvable:$true] %s293_s19 }
  0x41   : > { %p3231_p6 = scmp.lt.s32.totalorder %s2588_s7, 4  ;;  %s2815_s14 = scalar_lea.sflag [#allocation6], %s276_s10 }
  0x42   : > { %s2462_s15 = scalar_lea.hbm %s2805_s0, 4096  ;;  %s2467_s18 = scalar_lea.hbm %s3199_s1, 8192 }
  0x43   : > { %p2811_p10 = pnand %p3231_p6, %p90_p12  ;;  %p2463_p2 = scmp.ne.s32.totalorder %s2805_s0, %s2462_s15 }
  0x44   : > { %p2468_p7 = scmp.lt.u32.totalorder %s2805_s0, %s3199_s1  ;;  %p2469_p11 = scmp.lt.u32.totalorder %s2467_s18, %s2462_s15 }
  0x45   : > { %p2464_p4 = pneg %p2811_p10  ;;  %p2471_p5 = scmp.lt.u32.totalorder %s2462_s15, %s2805_s0 }
  0x46   : > { %p2470_p13 = por %p2469_p11, %p2468_p7 }
  0x47   : > { %p2465_p9 = pnand %p2464_p4, %p2463_p2 }
  0x48   : > { %p2472_p12 = por %p2471_p5, %p2470_p13 }
  0x49   : > { %p2466_p3 = pneg %p2465_p9 }
  0x4b   : > { %p2473_p0 = pnand %p2472_p12, %p2466_p3 }
  0x4d   : > { %2476 = shalt.err (!%p2473_p0)
}
  0x4e   : > { %s2477_s10 = scalar_lea.vmem %s2807_s19, 4096  ;;  %s2593_s29 = smov [#allocation5]  }
  0x4f   : > { %p2478_p6 = scmp.ne.s32.totalorder %s2807_s19, %s2477_s10  ;;  %s2482_s8 = sshll.u32 %s2593_s29, 4  ;;  %s2483_s8 = int_to_ptr.vmem [resolvable:$false] %s2482_s8 }
  0x50   : > { %s2484_s20 = scalar_lea.vmem %s2483_s8, 8192  ;;  %p2485_p1 = scmp.lt.s32.totalorder %s2807_s19, %s2483_s8 }
  0x51   : > { %p2480_p2 = pnand %p2478_p6, %p2464_p4  ;;  %p2486_p7 = scmp.lt.s32.totalorder %s2484_s20, %s2477_s10 }
  0x53   : > { %p2481_p9 = pneg %p2480_p2  ;;  %p2487_p11 = por %p2486_p7, %p2485_p1 }
  0x55   : > { %p2488_p13 = pnand %p2487_p11, %p2481_p9 }
  0x57   : > { %2491 = shalt.err (!%p2488_p13)
}
  0x58   : > { %s3233_s15 = smov 8   ;;  %s3234_s18 = smov 128  }
  0x59   : > { %2226 = dma.hbm_to_vmem [thread:$0]  (!%p2811_p10), %s2805_s0, 4096, %s2807_s19, %s2815_s14, %s3234_s18, %s3234_s18, %s3233_s15  }
  0x5a   : > { %313 = sbr.rel (%p2777_p8) target bundleno = 1000 (0x3e8), region = 44  ;;  %s315_s11 = sand.u32 (!%p2777_p8), 1, %s2564_s25  }
  0x5b   : > { %s1789_s24 = sshll.u32 (!%p2777_p8), %s315_s11, 8  ;;  %s316_s10 = scalar_lea.sflag (!%p2777_p8), [#allocation4], %s315_s11 }
  0x5c   : > { %s2849_s29 = scalar_lea.vmem (!%p2777_p8), [#allocation3], %s1789_s24  ;;  %p3235_p1 = scmp.ne.s32.totalorder (!%p2777_p8), %s3222_s16, 0 }
  0x61   : > { %2537 = dma.done.wait (%p3235_p1), %s316_s10, 4096  }
  0x62   : > { %2539 = vsyncadd (%p3235_p1), %s316_s10, 4294963200  ;;  %s324_s21 = sand.u32 1, %s2552_s22   ;;  %p3236_p8 = scmp.ne.s32.totalorder %s3227_s13, 0 }
  0x63   : > { %s1790_s8 = sshll.u32 %s324_s21, 8  ;;  %s325_s0 = scalar_lea.sflag [#allocation6], %s324_s21 }
  0x64   : > { %s2856_s19 = scalar_lea.vmem [#allocation5], %s1790_s8 }
  0x65   : > { %2541 = dma.done.wait (%p3236_p8), %s325_s0, 4096  }
  0x66   : > { %2543 = vsyncadd (%p3236_p8), %s325_s0, 4294963200  ;;  %p381_p10 = scmp.lt.s32.totalorder %s2576_s28, 1  ;;  %s1793_s12 = sadd.s32 4294967295, %s2572_s27 }
  0x67   : > { %p387_p4 = scmp.gt.s32.totalorder %s1793_s12, 0  ;;  %p1797_p5 = scmp.ge.s32.totalorder %s2572_s27, 1 }
  0x68   : > { %s3255_s28 = smov (!%p381_p10, %s2576_s28), 1  ;;  %v2336_v11 = vld [vmem:[%s2849_s29 + $0x4] ss:$8 sps:$4 sm:$0xff] (!%p1797_p5)   ;;  %v2334_v17 = vld [vmem:[%s2849_s29] ss:$8 sps:$4 sm:$0xff] (!%p1797_p5)   ;;  %vm959_vm0 = vcmask (!%p1797_p5), 261120  }
  0x69   : > { %s3257_s12 = smov (!%p387_p4, %s1793_s12), 0  ;;  %s1905_s16 = sshll.u32 %s3255_s28, 7  ;;  %766 = vmatprep.mubr.bf16.mxu0 (!%p1797_p5), %v2336_v11  ;;  %v2366_v18 = vld [vmem:[%s2849_s29 + $0xc4] ss:$8 sps:$4 sm:$0xff] (!%p1797_p5)   ;;  %v2337_v19 = vld [vmem:[%s2849_s29 + $0x14] ss:$8 sps:$4 sm:$0xff] (!%p1797_p5)  }
  0x6a   : > { %s2868_s15 = scalar_lea.vmem %s3200_s2, %s1905_s16  ;;  %s1794_s18 = sshll.u32 %s3257_s12, 5  ;;  %v2364_v20 = vld [vmem:[%s2849_s29 + $0xc0] ss:$8 sps:$4 sm:$0xff] (!%p1797_p5)   ;;  %862 = vmatprep.mubr.bf16.mxu1 (!%p1797_p5), %v2366_v18  ;;  %v2370_v21 = vld [vmem:[%s2849_s29 + $0xd4] ss:$8 sps:$4 sm:$0xff] (!%p1797_p5)   ;;  %vm1192_vm1 = vcmask (!%p1797_p5), 64512  }
  0x6b   : > { %p392_p3 = scmp.lt.s32.totalorder %s1794_s18, 31  ;;  %s1795_s11 = sshll.u32 %s3255_s28, 5  ;;  %v2318_v0 = vld [vmem:[%s2868_s15 + $0x40] sm:$0xff] (!%p1797_p5)   ;;  %v2320_v2 = vld [vmem:[%s2868_s15 + $0x48] sm:$0xff] (!%p1797_p5)   ;;  %v2322_v4 = vld [vmem:[%s2868_s15 + $0x50] sm:$0xff] (!%p1797_p5)  }
  0x6c   : > { %406 = sbr.rel (%p1797_p5) target bundleno = 685 (0x2ad), region = 56  ;;  %v2319_v1 = vld [vmem:[%s2868_s15] sm:$0xff] (!%p1797_p5)   ;;  %1906 = vmatprep.subr.bf16.mxu0 (!%p1797_p5), %v2318_v0  ;;  %2184 = vmatprep.subr.bf16.mxu1 (!%p1797_p5), %v2318_v0  ;;  %v2321_v3 = vld [vmem:[%s2868_s15 + $0x8] sm:$0xff] (!%p1797_p5)   ;;  %v2323_v5 = vld [vmem:[%s2868_s15 + $0x10] sm:$0xff] (!%p1797_p5)   ;;  %p1169_p12 = scmp.lt.s32.totalorder (!%p1797_p5), %s2572_s27, 0 }
  0x6d   : > { %s3259_s18 = smov (!%p392_p3, %s1794_s18), 31  ;;  %1907 = vmatpush3.bf16.msra.mxu0 (!%p1797_p5), %v2319_v1  ;;  %2192 = vmatpush3.bf16.msra.mxu1 (!%p1797_p5), %v2319_v1  ;;  %v2324_v6 = vld [vmem:[%s2868_s15 + $0x58] sm:$0xff] (!%p1797_p5)   ;;  %v2326_v8 = vld [vmem:[%s2868_s15 + $0x60] sm:$0xff] (!%p1797_p5)   ;;  %v2328_v10 = vld [vmem:[%s2868_s15 + $0x68] sm:$0xff] (!%p1797_p5)  }
  0x6e   : > { %s395_s13 = sadd.s32 %s1795_s11, %s3259_s18  ;;  %1908 = vmatprep.subr.bf16.mxu0 (!%p1797_p5), %v2320_v2  ;;  %2185 = vmatprep.subr.bf16.mxu1 (!%p1797_p5), %v2320_v2  ;;  %v2325_v7 = vld [vmem:[%s2868_s15 + $0x18] sm:$0xff] (!%p1797_p5)   ;;  %v2327_v9 = vld [vmem:[%s2868_s15 + $0x20] sm:$0xff] (!%p1797_p5)   ;;  %v2329_v12 = vld [vmem:[%s2868_s15 + $0x28] sm:$0xff] (!%p1797_p5)  }
  0x6f   : > { %s1796_s24 = sshll.u32 %s395_s13, 3  ;;  %v2330_v13 = vld [vmem:[%s2868_s15 + $0x70] sm:$0xff] (!%p1797_p5)   ;;  %v2332_v15 = vld [vmem:[%s2868_s15 + $0x78] sm:$0xff] (!%p1797_p5)   ;;  %v2340_v23 = vld [vmem:[%s2849_s29 + $0x24] ss:$8 sps:$4 sm:$0xff] (!%p1797_p5)  }
  0x70   : > { %s2873_s8 = scalar_lea.vmem %s3204_s6, %s1796_s24  ;;  %v2331_v14 = vld [vmem:[%s2868_s15 + $0x30] sm:$0xff] (!%p1797_p5)   ;;  %v2333_v16 = vld [vmem:[%s2868_s15 + $0x38] sm:$0xff] (!%p1797_p5)   ;;  %v2376_v25 = vld [vmem:[%s2849_s29 + $0xe4] ss:$8 sps:$4 sm:$0xff] (!%p1797_p5)  }
  0x71   : > { %1909 = vmatpush3.bf16.msra.mxu0 (!%p1797_p5), %v2321_v3  ;;  %2193 = vmatpush3.bf16.msra.mxu1 (!%p1797_p5), %v2321_v3  ;;  %v2339_v22 = vld [vmem:[%s2849_s29 + $0x10] ss:$8 sps:$4 sm:$0xff] (!%p1797_p5)   ;;  %v2342_v26 = vld [vmem:[%s2849_s29 + $0x20] ss:$8 sps:$4 sm:$0xff] (!%p1797_p5)   ;;  %v2343_v27 = vld [vmem:[%s2849_s29 + $0x34] ss:$8 sps:$4 sm:$0xff] (!%p1797_p5)  }
  0x72   : > { %1910 = vmatprep.subr.bf16.mxu0 (!%p1797_p5), %v2322_v4  ;;  %2186 = vmatprep.subr.bf16.mxu1 (!%p1797_p5), %v2322_v4  ;;  %v2372_v24 = vld [vmem:[%s2849_s29 + $0xd0] ss:$8 sps:$4 sm:$0xff] (!%p1797_p5)   ;;  %v2378_v28 = vld [vmem:[%s2849_s29 + $0xe0] ss:$8 sps:$4 sm:$0xff] (!%p1797_p5)   ;;  %v2379_v29 = vld [vmem:[%s2849_s29 + $0xf4] ss:$8 sps:$4 sm:$0xff] (!%p1797_p5)  }
  0x73   : > { %v2345_v30 = vld [vmem:[%s2849_s29 + $0x30] ss:$8 sps:$4 sm:$0xff]   ;;  %v2346_v31 = vld [vmem:[%s2849_s29 + $0x44] ss:$8 sps:$4 sm:$0xff]   ;;  %v2348_v33 = vld [vmem:[%s2849_s29 + $0x40] ss:$8 sps:$4 sm:$0xff]  }
  0x74   : > { %v2381_v32 = vld [vmem:[%s2849_s29 + $0xf0] ss:$8 sps:$4 sm:$0xff]   ;;  %v2349_v34 = vld [vmem:[%s2849_s29 + $0x54] ss:$8 sps:$4 sm:$0xff]   ;;  %v2352_v36 = vld [vmem:[%s2849_s29 + $0x64] ss:$8 sps:$4 sm:$0xff]  }
  0x75   : > { %1911 = vmatpush3.bf16.msra.mxu0 %v2323_v5  ;;  %2194 = vmatpush3.bf16.msra.mxu1 %v2323_v5  ;;  %v2351_v35 = vld [vmem:[%s2849_s29 + $0x50] ss:$8 sps:$4 sm:$0xff]   ;;  %v2354_v37 = vld [vmem:[%s2849_s29 + $0x60] ss:$8 sps:$4 sm:$0xff]   ;;  %v2355_v38 = vld [vmem:[%s2849_s29 + $0x74] ss:$8 sps:$4 sm:$0xff]  }
  0x76   : > { %1912 = vmatprep.subr.bf16.mxu0 %v2324_v6  ;;  %2187 = vmatprep.subr.bf16.mxu1 %v2324_v6  ;;  %v2357_v39 = vld [vmem:[%s2849_s29 + $0x70] ss:$8 sps:$4 sm:$0xff]   ;;  %v2358_v40 = vld [vmem:[%s2849_s29 + $0x84] ss:$8 sps:$4 sm:$0xff]   ;;  %v2360_v41 = vld [vmem:[%s2849_s29 + $0x80] ss:$8 sps:$4 sm:$0xff]  }
  0x77   : > { %v2361_v42 = vld [vmem:[%s2849_s29 + $0x94] ss:$8 sps:$4 sm:$0xff]   ;;  %v2363_v43 = vld [vmem:[%s2849_s29 + $0x90] ss:$8 sps:$4 sm:$0xff]   ;;  %v2367_v44 = vld [vmem:[%s2849_s29 + $0xa4] ss:$8 sps:$4 sm:$0xff]  }
  0x78   : > { %v2369_v45 = vld [vmem:[%s2849_s29 + $0xa0] ss:$8 sps:$4 sm:$0xff]   ;;  %v2373_v46 = vld [vmem:[%s2849_s29 + $0xb4] ss:$8 sps:$4 sm:$0xff]   ;;  %v2375_v47 = vld [vmem:[%s2849_s29 + $0xb0] ss:$8 sps:$4 sm:$0xff]  }
  0x79   : > { %1913 = vmatpush3.bf16.msra.mxu0 %v2325_v7  ;;  %2195 = vmatpush3.bf16.msra.mxu1 %v2325_v7  ;;  %v2382_v48 = vld [vmem:[%s3202_s4] sm:$0xff]   ;;  %v2383_v49 = vld [vmem:[%s3202_s4 + $0x8] sm:$0xff]   ;;  %s1170_s29 = scalar_select %p1169_p12, %s2572_s27, 0 }
  0x7a   : > { %1914 = vmatprep.subr.bf16.mxu0 %v2326_v8  ;;  %2188 = vmatprep.subr.bf16.mxu1 %v2326_v8  ;;  %v2933_v51 = vld [vmem:[%s3201_s3] ss:$0 sm:$0xff] }
  0x7b   : > { %s1865_s15 = sshll.u32 %s1170_s29, 8 }
  0x7c   : > { %s1188_s18 = sshra.s32 %s1865_s15, 4 }
  0x7d   : > { %1915 = vmatpush3.bf16.msra.mxu0 %v2327_v9  ;;  %2196 = vmatpush3.bf16.msra.mxu1 %v2327_v9  ;;  %s1866_s11 = sshll.u32 %s1188_s18, 3 }
  0x7e   : > { %1916 = vmatprep.subr.bf16.mxu0 %v2328_v10  ;;  %2189 = vmatprep.subr.bf16.mxu1 %v2328_v10  ;;  %s2997_s13 = scalar_lea.vmem [#allocation2], %s1866_s11 }
  0x81   : > { %1917 = vmatpush3.bf16.msra.mxu0 %v2329_v12  ;;  %2197 = vmatpush3.bf16.msra.mxu1 %v2329_v12 }
  0x82   : > { %1918 = vmatprep.subr.bf16.mxu0 %v2330_v13  ;;  %2190 = vmatprep.subr.bf16.mxu1 %v2330_v13 }
  0x85   : > { %1919 = vmatpush3.bf16.msra.mxu0 %v2331_v14  ;;  %2198 = vmatpush3.bf16.msra.mxu1 %v2331_v14 }
  0x86   : > { %1920 = vmatprep.subr.bf16.mxu0 %v2332_v15  ;;  %2191 = vmatprep.subr.bf16.mxu1 %v2332_v15 }
  0x89   : > { %1921 = vmatpush3.bf16.msra.mxu0 %v2333_v16  ;;  %2199 = vmatpush3.bf16.msra.mxu1 %v2333_v16 }
  0x8a   : > { %2148 = vmatprep.subr.bf16.mxu1 %v2382_v48 }
  0x8c   : > { %767 = vmatmul.mubr.bf16.vlgmr.msra.gmra.mrb[0].mxu0 %v2334_v17  ;;  %863 = vmatmul.mubr.bf16.vlgmr.msra.gmra.mrb[0].mxu1 %v2364_v20 }
  0x8d   : > { %774 = vmatprep.mubr.bf16.mxu0 %v2337_v19  ;;  %870 = vmatprep.mubr.bf16.mxu1 %v2370_v21 }
  0x8e   : > { %2149 = vmatpush3.bf16.msra.mxu1 %v2382_v48 }
  0x8f   : > { %2150 = vmatprep.subr.bf16.mxu1 %v2383_v49 }
  0x92   : > { %2151 = vmatpush3.bf16.msra.mxu1 %v2383_v49 }
  0x94   : > { %775 = vmatmul.mubr.bf16.gmra.mrb[4].mxu0 %v2339_v22  ;;  %871 = vmatmul.mubr.bf16.gmra.mrb[4].mxu1 %v2372_v24 }
  0x95   : > { %782 = vmatprep.mubr.bf16.mxu0 %v2340_v23  ;;  %878 = vmatprep.mubr.bf16.mxu1 %v2376_v25 }
  0x9c   : > { %783 = vmatmul.mubr.bf16.gmra.mrb[8].mxu0 %v2342_v26  ;;  %879 = vmatmul.mubr.bf16.gmra.mrb[8].mxu1 %v2378_v28 }
  0x9d   : > { %790 = vmatprep.mubr.bf16.mxu0 %v2343_v27  ;;  %886 = vmatprep.mubr.bf16.mxu1 %v2379_v29 }
  0xa4   : > { %791 = vmatmul.mubr.bf16.gmra.mrb[12].mxu0 %v2345_v30  ;;  %887 = vmatmul.mubr.bf16.gmra.mrb[12].mxu1 %v2381_v32 }
  0xa5   : > { %798 = vmatprep.mubr.bf16.mxu0 %v2346_v31 }
  0xac   : > { %799 = vmatmul.mubr.bf16.gmra.mrb[16].mxu0 %v2348_v33 }
  0xad   : > { %806 = vmatprep.mubr.bf16.mxu0 %v2349_v34 }
  0xb4   : > { %807 = vmatmul.mubr.bf16.gmra.mrb[20].mxu0 %v2351_v35 }
  0xb5   : > { %814 = vmatprep.mubr.bf16.mxu0 %v2352_v36 }
  0xbc   : > { %815 = vmatmul.mubr.bf16.gmra.mrb[24].mxu0 %v2354_v37 }
  0xbd   : > { %822 = vmatprep.mubr.bf16.mxu0 %v2355_v38 }
  0xc4   : > { %823 = vmatmul.mubr.bf16.gmra.mrb[28].mxu0 %v2357_v39 }
  0xc5   : > { %830 = vmatprep.mubr.bf16.mxu0 %v2358_v40 }
  0xcc   : > { %831 = vmatmul.mubr.bf16.gmra.mrb[32].mxu0 %v2360_v41 }
  0xcd   : > { %838 = vmatprep.mubr.bf16.mxu0 %v2361_v42 }
  0xd4   : > { %839 = vmatmul.mubr.bf16.gmra.mrb[36].mxu0 %v2363_v43 }
  0xd5   : > { %846 = vmatprep.mubr.bf16.mxu0 %v2367_v44 }
  0xdc   : > { %847 = vmatmul.mubr.bf16.gmra.mrb[40].mxu0 %v2369_v45 }
  0xdd   : > { %854 = vmatprep.mubr.bf16.mxu0 %v2373_v46 }
  0xe4   : > { %855 = vmatmul.mubr.bf16.gmra.mrb[44].mxu0 %v2375_v47 }
 0x15f   : > { %v1922_v50 = vpop.f32.mrb[0].mxu0  ;;  %v1994_v53 = vpop.f32.mrb[0].mxu1 }
 0x160   : > { %v1923_v52 = vpop.f32.mrb[1].mxu0  ;;  %v1995_v56 = vpop.f32.mrb[1].mxu1 }
 0x161   : > { %v1924_v54 = vadd.f32 %v1923_v52, %v1922_v50  ;;  %v1925_v55 = vpop.f32.mrb[2].mxu0  ;;  %v1996_v58 = vadd.f32 %v1995_v56, %v1994_v53  ;;  %v1997_v59 = vpop.f32.mrb[2].mxu1 }
 0x162   : > { %v1926_v57 = vpop.f32.mrb[3].mxu0  ;;  %v1998_v62 = vpop.f32.mrb[3].mxu1 }
 0x163   : > { %v769_v60 = vadd.f32 %v1924_v54, %v2933_v51  ;;  %v1927_v61 = vadd.f32 %v1926_v57, %v1925_v55  ;;  %v865_v63 = vadd.f32 %v1996_v58, %v2933_v51  ;;  %v1999_v0 = vadd.f32 %v1998_v62, %v1997_v59 }
 0x165   : > { %v772_v1 = vadd.f32 %v1927_v61, %v2933_v51  ;;  %v919_v2 = vmax.f32 %v865_v63, 0.0  ;;  %v868_v3 = vadd.f32 %v1999_v0, %v2933_v51  ;;  %v895_v4 = vmax.f32 %v769_v60, 0.0 }
 0x167   : > { %v896_v5 = vmax.f32 %v772_v1, 0.0  ;;  %v1928_v6 = vpop.f32.mrb[4].mxu0  ;;  %v920_v8 = vmax.f32 %v868_v3, 0.0  ;;  %v2000_v9 = vpop.f32.mrb[4].mxu1 }
 0x168   : > { %v1929_v7 = vpop.f32.mrb[5].mxu0  ;;  %v2001_v13 = vpop.f32.mrb[5].mxu1 }
 0x169   : > { %v927_v10 = vpack.c.bf16 %v896_v5, %v895_v4  ;;  %v1930_v11 = vadd.f32 %v1929_v7, %v1928_v6  ;;  %v1931_v12 = vpop.f32.mrb[6].mxu0  ;;  %v2939_v15 = vpack.c.bf16 %v920_v8, %v919_v2  ;;  %v2002_v16 = vadd.f32 %v2001_v13, %v2000_v9  ;;  %v2003_v17 = vpop.f32.mrb[6].mxu1 }
 0x16a   : > { %v1932_v14 = vpop.f32.mrb[7].mxu0  ;;  %v2004_v20 = vpop.f32.mrb[7].mxu1 }
 0x16b   : > { %v777_v18 = vadd.f32 %v1930_v11, %v2933_v51  ;;  %v1933_v19 = vadd.f32 %v1932_v14, %v1931_v12  ;;  %2152 = vmatprep.mubr.msk.bf16.mxu1 %vm959_vm0, %v927_v10  ;;  %v873_v21 = vadd.f32 %v2002_v16, %v2933_v51  ;;  %v2005_v22 = vadd.f32 %v2004_v20, %v2003_v17 }
 0x16d   : > { %v780_v23 = vadd.f32 %v1933_v19, %v2933_v51  ;;  %v921_v24 = vmax.f32 %v873_v21, 0.0  ;;  %v876_v25 = vadd.f32 %v2005_v22, %v2933_v51  ;;  %v897_v26 = vmax.f32 %v777_v18, 0.0 }
 0x16f   : > { %v898_v27 = vmax.f32 %v780_v23, 0.0  ;;  %v1934_v28 = vpop.f32.mrb[8].mxu0  ;;  %v922_v30 = vmax.f32 %v876_v25, 0.0  ;;  %v2006_v31 = vpop.f32.mrb[8].mxu1 }
 0x170   : > { %v1935_v29 = vpop.f32.mrb[9].mxu0  ;;  %v2007_v35 = vpop.f32.mrb[9].mxu1 }
 0x171   : > { %v928_v32 = vpack.c.bf16 %v898_v27, %v897_v26  ;;  %v1936_v33 = vadd.f32 %v1935_v29, %v1934_v28  ;;  %v1937_v34 = vpop.f32.mrb[10].mxu0  ;;  %v2946_v37 = vpack.c.bf16 %v922_v30, %v921_v24  ;;  %v2008_v38 = vadd.f32 %v2007_v35, %v2006_v31  ;;  %v2009_v39 = vpop.f32.mrb[10].mxu1 }
 0x172   : > { %v1938_v36 = vpop.f32.mrb[11].mxu0  ;;  %v2010_v42 = vpop.f32.mrb[11].mxu1 }
 0x173   : > { %v785_v40 = vadd.f32 %v1936_v33, %v2933_v51  ;;  %v1939_v41 = vadd.f32 %v1938_v36, %v1937_v34  ;;  %2153 = vmatmul.mubr.msk.bf16.vlgmr.msra.gmra.mrb[16].mxu1 %vm959_vm0, %v928_v32  ;;  %v881_v43 = vadd.f32 %v2008_v38, %v2933_v51  ;;  %v2011_v44 = vadd.f32 %v2010_v42, %v2009_v39 }
 0x175   : > { %v788_v45 = vadd.f32 %v1939_v41, %v2933_v51  ;;  %v923_v46 = vmax.f32 %v881_v43, 0.0  ;;  %v884_v47 = vadd.f32 %v2011_v44, %v2933_v51  ;;  %v899_v48 = vmax.f32 %v785_v40, 0.0 }
 0x177   : > { %v900_v49 = vmax.f32 %v788_v45, 0.0  ;;  %v1940_v50 = vpop.f32.mrb[12].mxu0  ;;  %v924_v53 = vmax.f32 %v884_v47, 0.0  ;;  %v2012_v54 = vpop.f32.mrb[12].mxu1 }
 0x178   : > { %v1941_v52 = vpop.f32.mrb[13].mxu0  ;;  %v2013_v58 = vpop.f32.mrb[13].mxu1 }
 0x179   : > { %v929_v55 = vpack.c.bf16 %v900_v49, %v899_v48  ;;  %v1942_v56 = vadd.f32 %v1941_v52, %v1940_v50  ;;  %v1943_v57 = vpop.f32.mrb[14].mxu0  ;;  %v2953_v60 = vpack.c.bf16 %v924_v53, %v923_v46  ;;  %v2014_v61 = vadd.f32 %v2013_v58, %v2012_v54  ;;  %v2015_v62 = vpop.f32.mrb[14].mxu1 }
 0x17a   : > { %v1944_v59 = vpop.f32.mrb[15].mxu0  ;;  %v2016_v1 = vpop.f32.mrb[15].mxu1 }
 0x17b   : > { %v793_v63 = vadd.f32 %v1942_v56, %v2933_v51  ;;  %v1945_v0 = vadd.f32 %v1944_v59, %v1943_v57  ;;  %2156 = vmatprep.mubr.msk.bf16.mxu1 %vm959_vm0, %v929_v55  ;;  %v889_v2 = vadd.f32 %v2014_v61, %v2933_v51  ;;  %v2017_v3 = vadd.f32 %v2016_v1, %v2015_v62 }
 0x17d   : > { %v796_v4 = vadd.f32 %v1945_v0, %v2933_v51  ;;  %v925_v5 = vmax.f32 %v889_v2, 0.0  ;;  %v892_v6 = vadd.f32 %v2017_v3, %v2933_v51  ;;  %v901_v7 = vmax.f32 %v793_v63, 0.0 }
 0x17f   : > { %v902_v8 = vmax.f32 %v796_v4, 0.0  ;;  %v1946_v9 = vpop.f32.mrb[16].mxu0  ;;  %v926_v11 = vmax.f32 %v892_v6, 0.0 }
 0x180   : > { %v1947_v10 = vpop.f32.mrb[17].mxu0 }
 0x181   : > { %v930_v12 = vpack.c.bf16 %v902_v8, %v901_v7  ;;  %v1948_v13 = vadd.f32 %v1947_v10, %v1946_v9  ;;  %v1949_v14 = vpop.f32.mrb[18].mxu0  ;;  %v2960_v17 = vpack.c.bf16 %v926_v11, %v925_v5 }
 0x182   : > { %v1950_v16 = vpop.f32.mrb[19].mxu0 }
 0x183   : > { %v801_v18 = vadd.f32 %v1948_v13, %v2933_v51  ;;  %v1951_v19 = vadd.f32 %v1950_v16, %v1949_v14  ;;  %2157 = vmatmul.mubr.msk.bf16.gmra.mrb[20].mxu1 %vm959_vm0, %v930_v12 }
 0x185   : > { %v804_v20 = vadd.f32 %v1951_v19, %v2933_v51  ;;  %v903_v21 = vmax.f32 %v801_v18, 0.0 }
 0x187   : > { %v904_v22 = vmax.f32 %v804_v20, 0.0  ;;  %v1952_v23 = vpop.f32.mrb[20].mxu0 }
 0x188   : > { %v1953_v24 = vpop.f32.mrb[21].mxu0 }
 0x189   : > { %v931_v25 = vpack.c.bf16 %v904_v22, %v903_v21  ;;  %v1954_v26 = vadd.f32 %v1953_v24, %v1952_v23  ;;  %v1955_v27 = vpop.f32.mrb[22].mxu0 }
 0x18a   : > { %v1956_v28 = vpop.f32.mrb[23].mxu0 }
 0x18b   : > { %v809_v29 = vadd.f32 %v1954_v26, %v2933_v51  ;;  %v1957_v30 = vadd.f32 %v1956_v28, %v1955_v27  ;;  %2160 = vmatprep.mubr.msk.bf16.mxu1 %vm959_vm0, %v931_v25 }
 0x18d   : > { %v812_v31 = vadd.f32 %v1957_v30, %v2933_v51  ;;  %v905_v32 = vmax.f32 %v809_v29, 0.0 }
 0x18f   : > { %v906_v33 = vmax.f32 %v812_v31, 0.0  ;;  %v1958_v34 = vpop.f32.mrb[24].mxu0 }
 0x190   : > { %v1959_v35 = vpop.f32.mrb[25].mxu0 }
 0x191   : > { %v932_v36 = vpack.c.bf16 %v906_v33, %v905_v32  ;;  %v1960_v38 = vadd.f32 %v1959_v35, %v1958_v34  ;;  %v1961_v39 = vpop.f32.mrb[26].mxu0 }
 0x192   : > { %v1962_v40 = vpop.f32.mrb[27].mxu0 }
 0x193   : > { %v817_v41 = vadd.f32 %v1960_v38, %v2933_v51  ;;  %v1963_v42 = vadd.f32 %v1962_v40, %v1961_v39  ;;  %2161 = vmatmul.mubr.msk.bf16.gmra.mrb[24].mxu1 %vm959_vm0, %v932_v36 }
 0x195   : > { %v820_v43 = vadd.f32 %v1963_v42, %v2933_v51  ;;  %v907_v44 = vmax.f32 %v817_v41, 0.0 }
 0x197   : > { %v908_v45 = vmax.f32 %v820_v43, 0.0  ;;  %v1964_v46 = vpop.f32.mrb[28].mxu0 }
 0x198   : > { %v1965_v47 = vpop.f32.mrb[29].mxu0 }
 0x199   : > { %v933_v48 = vpack.c.bf16 %v908_v45, %v907_v44  ;;  %v1966_v49 = vadd.f32 %v1965_v47, %v1964_v46  ;;  %v1967_v50 = vpop.f32.mrb[30].mxu0 }
 0x19a   : > { %v1968_v52 = vpop.f32.mrb[31].mxu0 }
 0x19b   : > { %v825_v53 = vadd.f32 %v1966_v49, %v2933_v51  ;;  %v1969_v54 = vadd.f32 %v1968_v52, %v1967_v50  ;;  %2164 = vmatprep.mubr.msk.bf16.mxu1 %vm959_vm0, %v933_v48 }
 0x19d   : > { %v828_v55 = vadd.f32 %v1969_v54, %v2933_v51  ;;  %v909_v56 = vmax.f32 %v825_v53, 0.0 }
 0x19f   : > { %v910_v57 = vmax.f32 %v828_v55, 0.0  ;;  %v1970_v58 = vpop.f32.mrb[32].mxu0 }
 0x1a0   : > { %v1971_v59 = vpop.f32.mrb[33].mxu0 }
 0x1a1   : > { %v934_v61 = vpack.c.bf16 %v910_v57, %v909_v56  ;;  %v1972_v62 = vadd.f32 %v1971_v59, %v1970_v58  ;;  %v1973_v63 = vpop.f32.mrb[34].mxu0 }
 0x1a2   : > { %v1974_v0 = vpop.f32.mrb[35].mxu0 }
 0x1a3   : > { %v833_v1 = vadd.f32 %v1972_v62, %v2933_v51  ;;  %v1975_v2 = vadd.f32 %v1974_v0, %v1973_v63  ;;  %2165 = vmatmul.mubr.msk.bf16.gmra.mrb[28].mxu1 %vm959_vm0, %v934_v61 }
 0x1a5   : > { %v836_v3 = vadd.f32 %v1975_v2, %v2933_v51  ;;  %v911_v4 = vmax.f32 %v833_v1, 0.0 }
 0x1a7   : > { %v912_v5 = vmax.f32 %v836_v3, 0.0  ;;  %v1976_v6 = vpop.f32.mrb[36].mxu0 }
 0x1a8   : > { %v1977_v7 = vpop.f32.mrb[37].mxu0 }
 0x1a9   : > { %v935_v8 = vpack.c.bf16 %v912_v5, %v911_v4  ;;  %v1978_v9 = vadd.f32 %v1977_v7, %v1976_v6  ;;  %v1979_v10 = vpop.f32.mrb[38].mxu0 }
 0x1aa   : > { %v1980_v11 = vpop.f32.mrb[39].mxu0 }
 0x1ab   : > { %v841_v12 = vadd.f32 %v1978_v9, %v2933_v51  ;;  %v1981_v13 = vadd.f32 %v1980_v11, %v1979_v10  ;;  %2168 = vmatprep.mubr.msk.bf16.mxu1 %vm959_vm0, %v935_v8 }
 0x1ad   : > { %v844_v14 = vadd.f32 %v1981_v13, %v2933_v51  ;;  %v913_v16 = vmax.f32 %v841_v12, 0.0 }
 0x1af   : > { %v914_v18 = vmax.f32 %v844_v14, 0.0  ;;  %v1982_v19 = vpop.f32.mrb[40].mxu0 }
 0x1b0   : > { %v1983_v20 = vpop.f32.mrb[41].mxu0 }
 0x1b1   : > { %v936_v21 = vpack.c.bf16 %v914_v18, %v913_v16  ;;  %v1984_v22 = vadd.f32 %v1983_v20, %v1982_v19  ;;  %v1985_v23 = vpop.f32.mrb[42].mxu0 }
 0x1b2   : > { %v1986_v24 = vpop.f32.mrb[43].mxu0 }
 0x1b3   : > { %v849_v25 = vadd.f32 %v1984_v22, %v2933_v51  ;;  %v1987_v26 = vadd.f32 %v1986_v24, %v1985_v23  ;;  %2169 = vmatmul.mubr.msk.bf16.gmra.mrb[32].mxu1 %vm959_vm0, %v936_v21 }
 0x1b5   : > { %v852_v27 = vadd.f32 %v1987_v26, %v2933_v51  ;;  %v915_v28 = vmax.f32 %v849_v25, 0.0 }
 0x1b7   : > { %v916_v29 = vmax.f32 %v852_v27, 0.0  ;;  %v1988_v30 = vpop.f32.mrb[44].mxu0 }
 0x1b8   : > { %v1989_v31 = vpop.f32.mrb[45].mxu0 }
 0x1b9   : > { %v937_v32 = vpack.c.bf16 %v916_v29, %v915_v28  ;;  %v1990_v33 = vadd.f32 %v1989_v31, %v1988_v30  ;;  %v1991_v34 = vpop.f32.mrb[46].mxu0 }
 0x1ba   : > { %v1992_v35 = vpop.f32.mrb[47].mxu0 }
 0x1bb   : > { %v857_v36 = vadd.f32 %v1990_v33, %v2933_v51  ;;  %v1993_v38 = vadd.f32 %v1992_v35, %v1991_v34  ;;  %2172 = vmatprep.mubr.msk.bf16.mxu1 %vm959_vm0, %v937_v32 }
 0x1bd   : > { %v860_v39 = vadd.f32 %v1993_v38, %v2933_v51  ;;  %v917_v40 = vmax.f32 %v857_v36, 0.0 }
 0x1bf   : > { %v918_v41 = vmax.f32 %v860_v39, 0.0 }
 0x1c1   : > { %v938_v42 = vpack.c.bf16 %v918_v41, %v917_v40 }
 0x1c3   : > { %2173 = vmatmul.mubr.msk.bf16.gmra.mrb[36].mxu1 %vm959_vm0, %v938_v42 }
 0x1c4   : > { %2176 = vmatprep.mubr.msk.bf16.mxu1 %vm959_vm0, %v2939_v15 }
 0x1cb   : > { %2177 = vmatmul.mubr.msk.bf16.gmra.mrb[40].mxu1 %vm959_vm0, %v2946_v37 }
 0x1cc   : > { %2180 = vmatprep.mubr.msk.bf16.mxu1 %vm959_vm0, %v2953_v60 }
 0x1d3   : > { %2181 = vmatmul.mubr.msk.bf16.gmra.mrb[44].mxu1 %vm959_vm0, %v2960_v17 }
 0x246   : > { %v2154_v51 = vpop.f32.mrb[16].mxu1 }
 0x247   : > { %v1042_v43 = vpop.f32.mrb[17].mxu1 }
 0x248   : > { %v2155_v44 = vpop.f32.mrb[18].mxu1 }
 0x249   : > { %v1173_v45 = vpack.c.bf16 %v2155_v44, %v2154_v51  ;;  %v1045_v15 = vpop.f32.mrb[19].mxu1 }
 0x24a   : > { %v1172_v46 = vpack.c.bf16 %v1045_v15, %v1042_v43 }
 0x24b   : > { %1194 = vst.msk [vmem:[%s2997_s13 + $0x8] sm:$0xff] %vm1192_vm1, %v1173_v45 }
 0x24c   : > { %1193 = vst.msk [vmem:[%s2997_s13] sm:$0xff] %vm1192_vm1, %v1172_v46 }
 0x256   : > { %v2158_v37 = vpop.f32.mrb[20].mxu1 }
 0x257   : > { %v1058_v60 = vpop.f32.mrb[21].mxu1 }
 0x258   : > { %v2159_v17 = vpop.f32.mrb[22].mxu1 }
 0x259   : > { %v1175_v47 = vpack.c.bf16 %v2159_v17, %v2158_v37  ;;  %v1061_v48 = vpop.f32.mrb[23].mxu1 }
 0x25a   : > { %v1174_v49 = vpack.c.bf16 %v1061_v48, %v1058_v60 }
 0x25b   : > { %1196 = vst.msk [vmem:[%s2997_s13 + $0x18] sm:$0xff] %vm1192_vm1, %v1175_v47 }
 0x25c   : > { %1195 = vst.msk [vmem:[%s2997_s13 + $0x10] sm:$0xff] %vm1192_vm1, %v1174_v49 }
 0x266   : > { %v2162_v50 = vpop.f32.mrb[24].mxu1 }
 0x267   : > { %v1074_v52 = vpop.f32.mrb[25].mxu1 }
 0x268   : > { %v2163_v53 = vpop.f32.mrb[26].mxu1 }
 0x269   : > { %v1177_v54 = vpack.c.bf16 %v2163_v53, %v2162_v50  ;;  %v1077_v55 = vpop.f32.mrb[27].mxu1 }
 0x26a   : > { %v1176_v56 = vpack.c.bf16 %v1077_v55, %v1074_v52 }
 0x26b   : > { %1198 = vst.msk [vmem:[%s2997_s13 + $0x28] sm:$0xff] %vm1192_vm1, %v1177_v54 }
 0x26c   : > { %1197 = vst.msk [vmem:[%s2997_s13 + $0x20] sm:$0xff] %vm1192_vm1, %v1176_v56 }
 0x276   : > { %v2166_v57 = vpop.f32.mrb[28].mxu1 }
 0x277   : > { %v1090_v58 = vpop.f32.mrb[29].mxu1 }
 0x278   : > { %v2167_v59 = vpop.f32.mrb[30].mxu1 }
 0x279   : > { %v1179_v61 = vpack.c.bf16 %v2167_v59, %v2166_v57  ;;  %v1093_v62 = vpop.f32.mrb[31].mxu1 }
 0x27a   : > { %v1178_v63 = vpack.c.bf16 %v1093_v62, %v1090_v58 }
 0x27b   : > { %1200 = vst.msk [vmem:[%s2997_s13 + $0x38] sm:$0xff] %vm1192_vm1, %v1179_v61 }
 0x27c   : > { %1199 = vst.msk [vmem:[%s2997_s13 + $0x30] sm:$0xff] %vm1192_vm1, %v1178_v63 }
 0x286   : > { %v2170_v0 = vpop.f32.mrb[32].mxu1 }
 0x287   : > { %v1106_v1 = vpop.f32.mrb[33].mxu1 }
 0x288   : > { %v2171_v2 = vpop.f32.mrb[34].mxu1 }
 0x289   : > { %v1181_v3 = vpack.c.bf16 %v2171_v2, %v2170_v0  ;;  %v1109_v4 = vpop.f32.mrb[35].mxu1 }
 0x28a   : > { %v1180_v5 = vpack.c.bf16 %v1109_v4, %v1106_v1 }
 0x28b   : > { %1202 = vst.msk [vmem:[%s2997_s13 + $0x48] sm:$0xff] %vm1192_vm1, %v1181_v3 }
 0x28c   : > { %1201 = vst.msk [vmem:[%s2997_s13 + $0x40] sm:$0xff] %vm1192_vm1, %v1180_v5 }
 0x296   : > { %v2174_v6 = vpop.f32.mrb[36].mxu1 }
 0x297   : > { %v1122_v7 = vpop.f32.mrb[37].mxu1 }
 0x298   : > { %v2175_v8 = vpop.f32.mrb[38].mxu1 }
 0x299   : > { %v1183_v9 = vpack.c.bf16 %v2175_v8, %v2174_v6  ;;  %v1125_v10 = vpop.f32.mrb[39].mxu1 }
 0x29a   : > { %v1182_v11 = vpack.c.bf16 %v1125_v10, %v1122_v7 }
 0x29b   : > { %1204 = vst.msk [vmem:[%s2997_s13 + $0x58] sm:$0xff] %vm1192_vm1, %v1183_v9 }
 0x29c   : > { %1203 = vst.msk [vmem:[%s2997_s13 + $0x50] sm:$0xff] %vm1192_vm1, %v1182_v11 }
 0x29e   : > { %v2178_v12 = vpop.f32.mrb[40].mxu1 }
 0x29f   : > { %v1138_v13 = vpop.f32.mrb[41].mxu1 }
 0x2a0   : > { %v2179_v14 = vpop.f32.mrb[42].mxu1 }
 0x2a1   : > { %v1185_v16 = vpack.c.bf16 %v2179_v14, %v2178_v12  ;;  %v1141_v18 = vpop.f32.mrb[43].mxu1 }
 0x2a2   : > { %v1184_v19 = vpack.c.bf16 %v1141_v18, %v1138_v13 }
 0x2a3   : > { %1206 = vst.msk [vmem:[%s2997_s13 + $0x68] sm:$0xff] %vm1192_vm1, %v1185_v16 }
 0x2a4   : > { %1205 = vst.msk [vmem:[%s2997_s13 + $0x60] sm:$0xff] %vm1192_vm1, %v1184_v19 }
 0x2a6   : > { %v2182_v20 = vpop.f32.mrb[44].mxu1 }
 0x2a7   : > { %v1154_v21 = vpop.f32.mrb[45].mxu1 }
 0x2a8   : > { %v2183_v22 = vpop.f32.mrb[46].mxu1 }
 0x2a9   : > { %v1187_v23 = vpack.c.bf16 %v2183_v22, %v2182_v20  ;;  %v1157_v24 = vpop.f32.mrb[47].mxu1 }
 0x2aa   : > { %v1186_v25 = vpack.c.bf16 %v1157_v24, %v1154_v21 }
 0x2ab   : > { %1208 = vst.msk [vmem:[%s2997_s13 + $0x78] sm:$0xff] %vm1192_vm1, %v1187_v23 }
 0x2ac   : > { %1207 = vst.msk [vmem:[%s2997_s13 + $0x70] sm:$0xff] %vm1192_vm1, %v1186_v25 }
 0x2ad PF: > { %p1867_p0 = scmp.lt.s32.totalorder %s2572_s27, 1 }
 0x2ae   : > { %v2386_v31 = vld [vmem:[%s2856_s19 + $0x4] ss:$8 sps:$4 sm:$0xff] (!%p1867_p0)   ;;  %v2384_v44 = vld [vmem:[%s2856_s19] ss:$8 sps:$4 sm:$0xff] (!%p1867_p0)   ;;  %v2390_v15 = vld [vmem:[%s2856_s19 + $0x14] ss:$8 sps:$4 sm:$0xff] (!%p1867_p0)  }
 0x2af   : > { %1212 = sbr.rel (%p1867_p0) target bundleno = 1000 (0x3e8), region = 60  ;;  %v2389_v33 = vld [vmem:[%s2856_s19 + $0x84] ss:$8 sps:$4 sm:$0xff] (!%p1867_p0)   ;;  %1460 = vmatprep.mubr.bf16.mxu0 (!%p1867_p0), %v2386_v31  ;;  %v2387_v45 = vld [vmem:[%s2856_s19 + $0x80] ss:$8 sps:$4 sm:$0xff] (!%p1867_p0)   ;;  %vm1589_vm2 = vcmask (!%p1867_p0), 64512  }
 0x2b0   : > { %1524 = vmatprep.mubr.bf16.mxu1 (!%p1867_p0), %v2389_v33  ;;  %v2392_v46 = vld [vmem:[%s2856_s19 + $0x94] ss:$8 sps:$4 sm:$0xff] (!%p1867_p0)   ;;  %v2394_v37 = vld [vmem:[%s2856_s19 + $0x10] ss:$8 sps:$4 sm:$0xff] (!%p1867_p0)   ;;  %v2396_v17 = vld [vmem:[%s2856_s19 + $0x24] ss:$8 sps:$4 sm:$0xff] (!%p1867_p0)  }
 0x2b1   : > { %v2395_v60 = vld [vmem:[%s2856_s19 + $0x90] ss:$8 sps:$4 sm:$0xff] (!%p1867_p0)   ;;  %v2398_v47 = vld [vmem:[%s2856_s19 + $0xa4] ss:$8 sps:$4 sm:$0xff] (!%p1867_p0)   ;;  %v2400_v48 = vld [vmem:[%s2856_s19 + $0x20] ss:$8 sps:$4 sm:$0xff] (!%p1867_p0)  }
 0x2b2   : > { %v2401_v49 = vld [vmem:[%s2856_s19 + $0xa0] ss:$8 sps:$4 sm:$0xff] (!%p1867_p0)   ;;  %v2402_v50 = vld [vmem:[%s2856_s19 + $0x34] ss:$8 sps:$4 sm:$0xff] (!%p1867_p0)   ;;  %v2406_v53 = vld [vmem:[%s2856_s19 + $0x30] ss:$8 sps:$4 sm:$0xff] (!%p1867_p0)  }
 0x2b3   : > { %v1253_v26 = vld [vmem:[#allocation2 + $0x40] sm:$0xff] (!%p1867_p0)  ;;  %v1254_v28 = vld [vmem:[#allocation2 + $0x48] sm:$0xff] (!%p1867_p0)  ;;  %v1255_v30 = vld [vmem:[#allocation2 + $0x50] sm:$0xff] (!%p1867_p0) }
 0x2b4   : > { %v1245_v27 = vld [vmem:[#allocation2] sm:$0xff] (!%p1867_p0)  ;;  %2036 = vmatprep.subr.bf16.mxu0 (!%p1867_p0), %v1253_v26  ;;  %2200 = vmatprep.subr.bf16.mxu1 (!%p1867_p0), %v1253_v26  ;;  %v1246_v29 = vld [vmem:[#allocation2 + $0x8] sm:$0xff] (!%p1867_p0)  ;;  %v1247_v32 = vld [vmem:[#allocation2 + $0x10] sm:$0xff] (!%p1867_p0) }
 0x2b5   : > { %2037 = vmatpush3.bf16.msra.mxu0 (!%p1867_p0), %v1245_v27  ;;  %2208 = vmatpush3.bf16.msra.mxu1 (!%p1867_p0), %v1245_v27  ;;  %v1256_v34 = vld [vmem:[#allocation2 + $0x58] sm:$0xff] (!%p1867_p0)  ;;  %v1257_v36 = vld [vmem:[#allocation2 + $0x60] sm:$0xff] (!%p1867_p0)  ;;  %v1258_v39 = vld [vmem:[#allocation2 + $0x68] sm:$0xff] (!%p1867_p0) }
 0x2b6   : > { %2038 = vmatprep.subr.bf16.mxu0 %v1254_v28  ;;  %2201 = vmatprep.subr.bf16.mxu1 %v1254_v28  ;;  %v1248_v35 = vld [vmem:[#allocation2 + $0x18] sm:$0xff]  ;;  %v1249_v38 = vld [vmem:[#allocation2 + $0x20] sm:$0xff]  ;;  %v1250_v40 = vld [vmem:[#allocation2 + $0x28] sm:$0xff] }
 0x2b7   : > { %v1259_v41 = vld [vmem:[#allocation2 + $0x70] sm:$0xff]  ;;  %v1260_v51 = vld [vmem:[#allocation2 + $0x78] sm:$0xff]  ;;  %v2408_v55 = vld [vmem:[%s2856_s19 + $0x44] ss:$8 sps:$4 sm:$0xff]  }
 0x2b8   : > { %v1251_v42 = vld [vmem:[#allocation2 + $0x30] sm:$0xff]  ;;  %v1252_v43 = vld [vmem:[#allocation2 + $0x38] sm:$0xff]  ;;  %v2410_v56 = vld [vmem:[%s2856_s19 + $0xc4] ss:$8 sps:$4 sm:$0xff]  }
 0x2b9   : > { %2039 = vmatpush3.bf16.msra.mxu0 %v1246_v29  ;;  %2209 = vmatpush3.bf16.msra.mxu1 %v1246_v29  ;;  %v2404_v52 = vld [vmem:[%s2856_s19 + $0xb4] ss:$8 sps:$4 sm:$0xff]   ;;  %v2407_v54 = vld [vmem:[%s2856_s19 + $0xb0] ss:$8 sps:$4 sm:$0xff]   ;;  %v2412_v57 = vld [vmem:[%s2856_s19 + $0x40] ss:$8 sps:$4 sm:$0xff]  }
 0x2ba   : > { %2040 = vmatprep.subr.bf16.mxu0 %v1255_v30  ;;  %2202 = vmatprep.subr.bf16.mxu1 %v1255_v30  ;;  %v2413_v58 = vld [vmem:[%s2856_s19 + $0xc0] ss:$8 sps:$4 sm:$0xff]   ;;  %v2414_v59 = vld [vmem:[%s2856_s19 + $0x54] ss:$8 sps:$4 sm:$0xff]   ;;  %v2418_v62 = vld [vmem:[%s2856_s19 + $0x50] ss:$8 sps:$4 sm:$0xff]  }
 0x2bb   : > { %v2416_v61 = vld [vmem:[%s2856_s19 + $0xd4] ss:$8 sps:$4 sm:$0xff]   ;;  %v2419_v63 = vld [vmem:[%s2856_s19 + $0xd0] ss:$8 sps:$4 sm:$0xff]   ;;  %v2420_v0 = vld [vmem:[%s2856_s19 + $0x64] ss:$8 sps:$4 sm:$0xff]  }
 0x2bc   : > { %v2422_v1 = vld [vmem:[%s2856_s19 + $0xe4] ss:$8 sps:$4 sm:$0xff]   ;;  %v2424_v2 = vld [vmem:[%s2856_s19 + $0x60] ss:$8 sps:$4 sm:$0xff]   ;;  %v2426_v4 = vld [vmem:[%s2856_s19 + $0x74] ss:$8 sps:$4 sm:$0xff]  }
 0x2bd   : > { %2041 = vmatpush3.bf16.msra.mxu0 %v1247_v32  ;;  %2210 = vmatpush3.bf16.msra.mxu1 %v1247_v32  ;;  %v2425_v3 = vld [vmem:[%s2856_s19 + $0xe0] ss:$8 sps:$4 sm:$0xff]   ;;  %v2428_v5 = vld [vmem:[%s2856_s19 + $0xf4] ss:$8 sps:$4 sm:$0xff]   ;;  %v2430_v6 = vld [vmem:[%s2856_s19 + $0x70] ss:$8 sps:$4 sm:$0xff]  }
 0x2be   : > { %2042 = vmatprep.subr.bf16.mxu0 %v1256_v34  ;;  %2203 = vmatprep.subr.bf16.mxu1 %v1256_v34  ;;  %v2431_v7 = vld [vmem:[%s2856_s19 + $0xf0] ss:$8 sps:$4 sm:$0xff]   ;;  %v3067_v10 = vld [vmem:[%s3203_s5] ss:$0 sm:$0xff] }
 0x2c1   : > { %2043 = vmatpush3.bf16.msra.mxu0 %v1248_v35  ;;  %2211 = vmatpush3.bf16.msra.mxu1 %v1248_v35 }
 0x2c2   : > { %2044 = vmatprep.subr.bf16.mxu0 %v1257_v36  ;;  %2204 = vmatprep.subr.bf16.mxu1 %v1257_v36 }
 0x2c5   : > { %2045 = vmatpush3.bf16.msra.mxu0 %v1249_v38  ;;  %2212 = vmatpush3.bf16.msra.mxu1 %v1249_v38 }
 0x2c6   : > { %2046 = vmatprep.subr.bf16.mxu0 %v1258_v39  ;;  %2205 = vmatprep.subr.bf16.mxu1 %v1258_v39 }
 0x2c9   : > { %2047 = vmatpush3.bf16.msra.mxu0 %v1250_v40  ;;  %2213 = vmatpush3.bf16.msra.mxu1 %v1250_v40 }
 0x2ca   : > { %2048 = vmatprep.subr.bf16.mxu0 %v1259_v41  ;;  %2206 = vmatprep.subr.bf16.mxu1 %v1259_v41 }
 0x2cd   : > { %2049 = vmatpush3.bf16.msra.mxu0 %v1251_v42  ;;  %2214 = vmatpush3.bf16.msra.mxu1 %v1251_v42 }
 0x2ce   : > { %2050 = vmatprep.subr.bf16.mxu0 %v1260_v51  ;;  %2207 = vmatprep.subr.bf16.mxu1 %v1260_v51 }
 0x2d1   : > { %2051 = vmatpush3.bf16.msra.mxu0 %v1252_v43  ;;  %2215 = vmatpush3.bf16.msra.mxu1 %v1252_v43 }
 0x2d4   : > { %1461 = vmatmul.mubr.bf16.vlgmr.msra.gmra.mrb[0].mxu0 %v2384_v44  ;;  %1525 = vmatmul.mubr.bf16.vlgmr.msra.gmra.mrb[0].mxu1 %v2387_v45 }
 0x2d5   : > { %1468 = vmatprep.mubr.bf16.mxu0 %v2390_v15  ;;  %1532 = vmatprep.mubr.bf16.mxu1 %v2392_v46 }
 0x2dc   : > { %1469 = vmatmul.mubr.bf16.gmra.mrb[4].mxu0 %v2394_v37  ;;  %1533 = vmatmul.mubr.bf16.gmra.mrb[4].mxu1 %v2395_v60 }
 0x2dd   : > { %1476 = vmatprep.mubr.bf16.mxu0 %v2396_v17  ;;  %1540 = vmatprep.mubr.bf16.mxu1 %v2398_v47 }
 0x2e4   : > { %1477 = vmatmul.mubr.bf16.gmra.mrb[8].mxu0 %v2400_v48  ;;  %1541 = vmatmul.mubr.bf16.gmra.mrb[8].mxu1 %v2401_v49 }
 0x2e5   : > { %1484 = vmatprep.mubr.bf16.mxu0 %v2402_v50  ;;  %1548 = vmatprep.mubr.bf16.mxu1 %v2404_v52 }
 0x2ec   : > { %1485 = vmatmul.mubr.bf16.gmra.mrb[12].mxu0 %v2406_v53  ;;  %1549 = vmatmul.mubr.bf16.gmra.mrb[12].mxu1 %v2407_v54 }
 0x2ed   : > { %1492 = vmatprep.mubr.bf16.mxu0 %v2408_v55  ;;  %1556 = vmatprep.mubr.bf16.mxu1 %v2410_v56 }
 0x2f4   : > { %1493 = vmatmul.mubr.bf16.gmra.mrb[16].mxu0 %v2412_v57  ;;  %1557 = vmatmul.mubr.bf16.gmra.mrb[16].mxu1 %v2413_v58 }
 0x2f5   : > { %1500 = vmatprep.mubr.bf16.mxu0 %v2414_v59  ;;  %1564 = vmatprep.mubr.bf16.mxu1 %v2416_v61 }
 0x2fc   : > { %1501 = vmatmul.mubr.bf16.gmra.mrb[20].mxu0 %v2418_v62  ;;  %1565 = vmatmul.mubr.bf16.gmra.mrb[20].mxu1 %v2419_v63 }
 0x2fd   : > { %1508 = vmatprep.mubr.bf16.mxu0 %v2420_v0  ;;  %1572 = vmatprep.mubr.bf16.mxu1 %v2422_v1 }
 0x304   : > { %1509 = vmatmul.mubr.bf16.gmra.mrb[24].mxu0 %v2424_v2  ;;  %1573 = vmatmul.mubr.bf16.gmra.mrb[24].mxu1 %v2425_v3 }
 0x305   : > { %1516 = vmatprep.mubr.bf16.mxu0 %v2426_v4  ;;  %1580 = vmatprep.mubr.bf16.mxu1 %v2428_v5 }
 0x30c   : > { %1517 = vmatmul.mubr.bf16.gmra.mrb[28].mxu0 %v2430_v6  ;;  %1581 = vmatmul.mubr.bf16.gmra.mrb[28].mxu1 %v2431_v7 }
 0x3a7   : > { %v2052_v8 = vpop.f32.mrb[0].mxu0  ;;  %v2100_v9 = vpop.f32.mrb[0].mxu1 }
 0x3a8   : > { %v2053_v11 = vpop.f32.mrb[1].mxu0  ;;  %v2101_v12 = vpop.f32.mrb[1].mxu1 }
 0x3a9   : > { %v2054_v13 = vadd.f32 %v2053_v11, %v2052_v8  ;;  %v2102_v14 = vadd.f32 %v2101_v12, %v2100_v9  ;;  %v2055_v16 = vpop.f32.mrb[2].mxu0  ;;  %v2103_v18 = vpop.f32.mrb[2].mxu1 }
 0x3aa   : > { %v2056_v19 = vpop.f32.mrb[3].mxu0  ;;  %v2104_v20 = vpop.f32.mrb[3].mxu1 }
 0x3ab   : > { %v1463_v21 = vadd.f32 %v2054_v13, %v3067_v10  ;;  %v1527_v22 = vadd.f32 %v2102_v14, %v3067_v10  ;;  %v2057_v23 = vadd.f32 %v2056_v19, %v2055_v16  ;;  %v2105_v24 = vadd.f32 %v2104_v20, %v2103_v18 }
 0x3ad   : > { %1590 = vst.msk [vmem:[%s2873_s8] sm:$0xff] %vm1589_vm2, %v1463_v21  ;;  %1606 = vst.msk [vmem:[%s2873_s8 + $0x80] sm:$0xff] %vm1589_vm2, %v1527_v22  ;;  %v1466_v25 = vadd.f32 %v2057_v23, %v3067_v10  ;;  %v1530_v26 = vadd.f32 %v2105_v24, %v3067_v10 }
 0x3af   : > { %1591 = vst.msk [vmem:[%s2873_s8 + $0x8] sm:$0xff] %vm1589_vm2, %v1466_v25  ;;  %1607 = vst.msk [vmem:[%s2873_s8 + $0x88] sm:$0xff] %vm1589_vm2, %v1530_v26  ;;  %v2058_v27 = vpop.f32.mrb[4].mxu0  ;;  %v2106_v28 = vpop.f32.mrb[4].mxu1 }
 0x3b0   : > { %v2059_v29 = vpop.f32.mrb[5].mxu0  ;;  %v2107_v30 = vpop.f32.mrb[5].mxu1 }
 0x3b1   : > { %v2060_v31 = vadd.f32 %v2059_v29, %v2058_v27  ;;  %v2108_v32 = vadd.f32 %v2107_v30, %v2106_v28  ;;  %v2061_v33 = vpop.f32.mrb[6].mxu0  ;;  %v2109_v34 = vpop.f32.mrb[6].mxu1 }
 0x3b2   : > { %v2062_v35 = vpop.f32.mrb[7].mxu0  ;;  %v2110_v36 = vpop.f32.mrb[7].mxu1 }
 0x3b3   : > { %v1471_v38 = vadd.f32 %v2060_v31, %v3067_v10  ;;  %v1535_v39 = vadd.f32 %v2108_v32, %v3067_v10  ;;  %v2063_v40 = vadd.f32 %v2062_v35, %v2061_v33  ;;  %v2111_v41 = vadd.f32 %v2110_v36, %v2109_v34 }
 0x3b5   : > { %1592 = vst.msk [vmem:[%s2873_s8 + $0x10] sm:$0xff] %vm1589_vm2, %v1471_v38  ;;  %1608 = vst.msk [vmem:[%s2873_s8 + $0x90] sm:$0xff] %vm1589_vm2, %v1535_v39  ;;  %v1474_v42 = vadd.f32 %v2063_v40, %v3067_v10  ;;  %v1538_v51 = vadd.f32 %v2111_v41, %v3067_v10 }
 0x3b7   : > { %1593 = vst.msk [vmem:[%s2873_s8 + $0x18] sm:$0xff] %vm1589_vm2, %v1474_v42  ;;  %1609 = vst.msk [vmem:[%s2873_s8 + $0x98] sm:$0xff] %vm1589_vm2, %v1538_v51  ;;  %v2064_v43 = vpop.f32.mrb[8].mxu0  ;;  %v2112_v44 = vpop.f32.mrb[8].mxu1 }
 0x3b8   : > { %v2065_v45 = vpop.f32.mrb[9].mxu0  ;;  %v2113_v15 = vpop.f32.mrb[9].mxu1 }
 0x3b9   : > { %v2066_v46 = vadd.f32 %v2065_v45, %v2064_v43  ;;  %v2114_v37 = vadd.f32 %v2113_v15, %v2112_v44  ;;  %v2067_v60 = vpop.f32.mrb[10].mxu0  ;;  %v2115_v17 = vpop.f32.mrb[10].mxu1 }
 0x3ba   : > { %v2068_v47 = vpop.f32.mrb[11].mxu0  ;;  %v2116_v48 = vpop.f32.mrb[11].mxu1 }
 0x3bb   : > { %v1479_v49 = vadd.f32 %v2066_v46, %v3067_v10  ;;  %v1543_v50 = vadd.f32 %v2114_v37, %v3067_v10  ;;  %v2069_v52 = vadd.f32 %v2068_v47, %v2067_v60  ;;  %v2117_v53 = vadd.f32 %v2116_v48, %v2115_v17 }
 0x3bd   : > { %1594 = vst.msk [vmem:[%s2873_s8 + $0x20] sm:$0xff] %vm1589_vm2, %v1479_v49  ;;  %1610 = vst.msk [vmem:[%s2873_s8 + $0xa0] sm:$0xff] %vm1589_vm2, %v1543_v50  ;;  %v1482_v54 = vadd.f32 %v2069_v52, %v3067_v10  ;;  %v1546_v55 = vadd.f32 %v2117_v53, %v3067_v10 }
 0x3bf   : > { %1595 = vst.msk [vmem:[%s2873_s8 + $0x28] sm:$0xff] %vm1589_vm2, %v1482_v54  ;;  %1611 = vst.msk [vmem:[%s2873_s8 + $0xa8] sm:$0xff] %vm1589_vm2, %v1546_v55  ;;  %v2070_v56 = vpop.f32.mrb[12].mxu0  ;;  %v2118_v57 = vpop.f32.mrb[12].mxu1 }
 0x3c0   : > { %v2071_v58 = vpop.f32.mrb[13].mxu0  ;;  %v2119_v59 = vpop.f32.mrb[13].mxu1 }
 0x3c1   : > { %v2072_v61 = vadd.f32 %v2071_v58, %v2070_v56  ;;  %v2120_v62 = vadd.f32 %v2119_v59, %v2118_v57  ;;  %v2073_v63 = vpop.f32.mrb[14].mxu0  ;;  %v2121_v0 = vpop.f32.mrb[14].mxu1 }
 0x3c2   : > { %v2074_v1 = vpop.f32.mrb[15].mxu0  ;;  %v2122_v2 = vpop.f32.mrb[15].mxu1 }
 0x3c3   : > { %v1487_v3 = vadd.f32 %v2072_v61, %v3067_v10  ;;  %v1551_v4 = vadd.f32 %v2120_v62, %v3067_v10  ;;  %v2075_v5 = vadd.f32 %v2074_v1, %v2073_v63  ;;  %v2123_v6 = vadd.f32 %v2122_v2, %v2121_v0 }
 0x3c5   : > { %1596 = vst.msk [vmem:[%s2873_s8 + $0x30] sm:$0xff] %vm1589_vm2, %v1487_v3  ;;  %1612 = vst.msk [vmem:[%s2873_s8 + $0xb0] sm:$0xff] %vm1589_vm2, %v1551_v4  ;;  %v1490_v7 = vadd.f32 %v2075_v5, %v3067_v10  ;;  %v1554_v8 = vadd.f32 %v2123_v6, %v3067_v10 }
 0x3c7   : > { %1597 = vst.msk [vmem:[%s2873_s8 + $0x38] sm:$0xff] %vm1589_vm2, %v1490_v7  ;;  %1613 = vst.msk [vmem:[%s2873_s8 + $0xb8] sm:$0xff] %vm1589_vm2, %v1554_v8  ;;  %v2076_v9 = vpop.f32.mrb[16].mxu0  ;;  %v2124_v11 = vpop.f32.mrb[16].mxu1 }
 0x3c8   : > { %v2077_v12 = vpop.f32.mrb[17].mxu0  ;;  %v2125_v13 = vpop.f32.mrb[17].mxu1 }
 0x3c9   : > { %v2078_v14 = vadd.f32 %v2077_v12, %v2076_v9  ;;  %v2126_v16 = vadd.f32 %v2125_v13, %v2124_v11  ;;  %v2079_v18 = vpop.f32.mrb[18].mxu0  ;;  %v2127_v19 = vpop.f32.mrb[18].mxu1 }
 0x3ca   : > { %v2080_v20 = vpop.f32.mrb[19].mxu0  ;;  %v2128_v21 = vpop.f32.mrb[19].mxu1 }
 0x3cb   : > { %v1495_v22 = vadd.f32 %v2078_v14, %v3067_v10  ;;  %v1559_v23 = vadd.f32 %v2126_v16, %v3067_v10  ;;  %v2081_v24 = vadd.f32 %v2080_v20, %v2079_v18  ;;  %v2129_v25 = vadd.f32 %v2128_v21, %v2127_v19 }
 0x3cd   : > { %1598 = vst.msk [vmem:[%s2873_s8 + $0x40] sm:$0xff] %vm1589_vm2, %v1495_v22  ;;  %1614 = vst.msk [vmem:[%s2873_s8 + $0xc0] sm:$0xff] %vm1589_vm2, %v1559_v23  ;;  %v1498_v26 = vadd.f32 %v2081_v24, %v3067_v10  ;;  %v1562_v27 = vadd.f32 %v2129_v25, %v3067_v10 }
 0x3cf   : > { %1599 = vst.msk [vmem:[%s2873_s8 + $0x48] sm:$0xff] %vm1589_vm2, %v1498_v26  ;;  %1615 = vst.msk [vmem:[%s2873_s8 + $0xc8] sm:$0xff] %vm1589_vm2, %v1562_v27  ;;  %v2082_v28 = vpop.f32.mrb[20].mxu0  ;;  %v2130_v29 = vpop.f32.mrb[20].mxu1 }
 0x3d0   : > { %v2083_v30 = vpop.f32.mrb[21].mxu0  ;;  %v2131_v31 = vpop.f32.mrb[21].mxu1 }
 0x3d1   : > { %v2084_v32 = vadd.f32 %v2083_v30, %v2082_v28  ;;  %v2132_v33 = vadd.f32 %v2131_v31, %v2130_v29  ;;  %v2085_v34 = vpop.f32.mrb[22].mxu0  ;;  %v2133_v35 = vpop.f32.mrb[22].mxu1 }
 0x3d2   : > { %v2086_v36 = vpop.f32.mrb[23].mxu0  ;;  %v2134_v38 = vpop.f32.mrb[23].mxu1 }
 0x3d3   : > { %v1503_v39 = vadd.f32 %v2084_v32, %v3067_v10  ;;  %v1567_v40 = vadd.f32 %v2132_v33, %v3067_v10  ;;  %v2087_v41 = vadd.f32 %v2086_v36, %v2085_v34  ;;  %v2135_v42 = vadd.f32 %v2134_v38, %v2133_v35 }
 0x3d5   : > { %1600 = vst.msk [vmem:[%s2873_s8 + $0x50] sm:$0xff] %vm1589_vm2, %v1503_v39  ;;  %1616 = vst.msk [vmem:[%s2873_s8 + $0xd0] sm:$0xff] %vm1589_vm2, %v1567_v40  ;;  %v1506_v51 = vadd.f32 %v2087_v41, %v3067_v10  ;;  %v1570_v43 = vadd.f32 %v2135_v42, %v3067_v10 }
 0x3d7   : > { %1601 = vst.msk [vmem:[%s2873_s8 + $0x58] sm:$0xff] %vm1589_vm2, %v1506_v51  ;;  %1617 = vst.msk [vmem:[%s2873_s8 + $0xd8] sm:$0xff] %vm1589_vm2, %v1570_v43  ;;  %v2088_v44 = vpop.f32.mrb[24].mxu0  ;;  %v2136_v45 = vpop.f32.mrb[24].mxu1 }
 0x3d8   : > { %v2089_v15 = vpop.f32.mrb[25].mxu0  ;;  %v2137_v46 = vpop.f32.mrb[25].mxu1 }
 0x3d9   : > { %v2090_v37 = vadd.f32 %v2089_v15, %v2088_v44  ;;  %v2138_v60 = vadd.f32 %v2137_v46, %v2136_v45  ;;  %v2091_v17 = vpop.f32.mrb[26].mxu0  ;;  %v2139_v47 = vpop.f32.mrb[26].mxu1 }
 0x3da   : > { %v2092_v48 = vpop.f32.mrb[27].mxu0  ;;  %v2140_v49 = vpop.f32.mrb[27].mxu1 }
 0x3db   : > { %v1511_v50 = vadd.f32 %v2090_v37, %v3067_v10  ;;  %v1575_v52 = vadd.f32 %v2138_v60, %v3067_v10  ;;  %v2093_v53 = vadd.f32 %v2092_v48, %v2091_v17  ;;  %v2141_v54 = vadd.f32 %v2140_v49, %v2139_v47 }
 0x3dd   : > { %1602 = vst.msk [vmem:[%s2873_s8 + $0x60] sm:$0xff] %vm1589_vm2, %v1511_v50  ;;  %1618 = vst.msk [vmem:[%s2873_s8 + $0xe0] sm:$0xff] %vm1589_vm2, %v1575_v52  ;;  %v1514_v55 = vadd.f32 %v2093_v53, %v3067_v10  ;;  %v1578_v56 = vadd.f32 %v2141_v54, %v3067_v10 }
 0x3df   : > { %1603 = vst.msk [vmem:[%s2873_s8 + $0x68] sm:$0xff] %vm1589_vm2, %v1514_v55  ;;  %1619 = vst.msk [vmem:[%s2873_s8 + $0xe8] sm:$0xff] %vm1589_vm2, %v1578_v56  ;;  %v2094_v57 = vpop.f32.mrb[28].mxu0  ;;  %v2142_v58 = vpop.f32.mrb[28].mxu1 }
 0x3e0   : > { %v2095_v59 = vpop.f32.mrb[29].mxu0  ;;  %v2143_v61 = vpop.f32.mrb[29].mxu1 }
 0x3e1   : > { %v2096_v62 = vadd.f32 %v2095_v59, %v2094_v57  ;;  %v2144_v63 = vadd.f32 %v2143_v61, %v2142_v58  ;;  %v2097_v0 = vpop.f32.mrb[30].mxu0  ;;  %v2145_v1 = vpop.f32.mrb[30].mxu1 }
 0x3e2   : > { %v2098_v2 = vpop.f32.mrb[31].mxu0  ;;  %v2146_v3 = vpop.f32.mrb[31].mxu1 }
 0x3e3   : > { %v1519_v4 = vadd.f32 %v2096_v62, %v3067_v10  ;;  %v1583_v5 = vadd.f32 %v2144_v63, %v3067_v10  ;;  %v2099_v6 = vadd.f32 %v2098_v2, %v2097_v0  ;;  %v2147_v7 = vadd.f32 %v2146_v3, %v2145_v1 }
 0x3e5   : > { %1604 = vst.msk [vmem:[%s2873_s8 + $0x70] sm:$0xff] %vm1589_vm2, %v1519_v4  ;;  %1620 = vst.msk [vmem:[%s2873_s8 + $0xf0] sm:$0xff] %vm1589_vm2, %v1583_v5  ;;  %v1522_v8 = vadd.f32 %v2099_v6, %v3067_v10  ;;  %v1586_v9 = vadd.f32 %v2147_v7, %v3067_v10 }
 0x3e7   : > { %1605 = vst.msk [vmem:[%s2873_s8 + $0x78] sm:$0xff] %vm1589_vm2, %v1522_v8  ;;  %1621 = vst.msk [vmem:[%s2873_s8 + $0xf8] sm:$0xff] %vm1589_vm2, %v1586_v9 }
 0x3e8 PF: > { %s22_s7 = sadd.s32 1, %s2588_s7   ;;  %s3237_s27 = sld [smem:[#allocation9_spill]] }
 0x3e9   : > { %p19_p6 = scmp.ge.s32.totalorder %s22_s7, 6   ;;  %s3238_s29 = sld [smem:[#allocation10_spill]] }
 0x3ea   : > { %s3239_s19 = sld [smem:[#allocation11_spill]]  ;;  %s3240_s21 = smov %s2552_s22 }
 0x3eb   : > { %s3241_s22 = smov %s2556_s23  ;;  %s3242_s23 = smov %s2798_s9 }
 0x3ec   : > { %s3243_s24 = smov %s2564_s25  ;;  %s3244_s25 = smov %s2568_s26 }
 0x3ed   : > { %s3245_s26 = smov %s2721_s17  ;;  %s3246_s28 = smov %s2584_s30 }
 0x3ee   :  { %21 = sbr.rel (!%p19_p6) target bundleno = 11 (0xb), region = 109 }
 0x3f0   : > { %s3247_s30 = smov %s3239_s19 }
 0x3f5   :  { %1661 = vsyncpa [#allocation4], 1 }
 0x3f6   :  { %1663 = vsyncpa [#allocation4 + $0x1], 1 }
 0x3f7   :  { %1664 = vsyncpa [#allocation6], 1 }
 0x3f8   :  { %1666 = vsyncpa [#allocation6 + $0x1], 1 }

</bundles_post_ra>
